<compile_context>
chip_gen: v7x
topology: tpu7x:2x2x1
jax: 0.10.0
libtpu: 0.0.40
codegen_flags: <defaults>
</compile_context>

<pallas_src>
import functools

import jax
import jax.numpy as jnp
import numpy as np
from jax.experimental import pallas as pl
from jax.experimental.pallas import tpu as pltpu


def _attn_pool_kernel(x_ref, a_ref, bias_ref, o_ref, *, t2, d):
    """x_ref: (tn, t*d); a_ref: (t*d, 3*t2*d); bias_ref: (1, 3*t2*d); o_ref: (tn, t2*d)."""
    f32 = jnp.float32

    # Fused q/k/v frame-mixing projection on the MXU: (tn, t*d) @ (t*d, 3*t2*d) -> (tn, 3*t2*d)
    # with f32 accumulation.  The q-scale and all biases are pre-folded by the wrapper.
    qkv = jnp.dot(x_ref[...], a_ref[...], preferred_element_type=f32)
    qkv = qkv + bias_ref[...]                                   # (1, 3*t2*d) row broadcast

    # Per-pooled-frame (tn, d) slabs: q | k | v blocks are each t2*d lanes wide.
    qs = [qkv[:, (0 * t2 + s) * d:(0 * t2 + s + 1) * d] for s in range(t2)]
    ks = [qkv[:, (1 * t2 + u) * d:(1 * t2 + u + 1) * d] for u in range(t2)]
    vs = [qkv[:, (2 * t2 + u) * d:(2 * t2 + u + 1) * d] for u in range(t2)]

    outs = []
    for s in range(t2):
        # Per-token logits against the t2 key frames, kept as separate (tn, 1) columns
        # (no concatenate, no cross-lane reduce over a lane-padded (tn, t2) array).
        cols = [jnp.sum(qs[s] * ks[u], axis=-1, keepdims=True) for u in range(t2)]
        m = cols[0]
        for u in range(1, t2):
            m = jnp.maximum(m, cols[u])
        ps = [jnp.exp(c - m) for c in cols]
        denom = ps[0]
        for u in range(1, t2):
            denom = denom + ps[u]
        inv = 1.0 / denom                                       # exact divide (EUP), no approx
        acc = qs[s]
        for u in range(t2):
            acc = acc + (ps[u] * inv) * vs[u]                   # (tn,1) * (tn,d) broadcast FMA
        outs.append(acc)

    # Lane-dense (tn, t2*d) output tile; column order matches the contiguous reshape to
    # 'n (b s) d' done by the wrapper (no HBM transpose anywhere).
    o_ref[...] = jnp.concatenate(outs, axis=-1).astype(o_ref.dtype)


def _pick_tn(n, b, sublane):
    """Largest multiple-of-`sublane` divisor of n, capped at 512; keep a few grid steps."""
    cands = [k for k in range(sublane, min(n, 512) + 1, sublane) if n % k == 0]
    if not cands:
        return n                      # full-extent block (allowed even if not a multiple of 8)
    tn = max(cands)
    # v7x has 2 TensorCores: keep >=4 'parallel' grid steps alive when it costs little.
    while tn > 256 and b * (n // tn) < 4 and (tn // 2) in cands:
        tn //= 2
    return tn


@functools.partial(jax.jit, static_argnames=("embed_dim", "current_frame", "tn"))
def temporal_pooling_attn(x, w_q, b_q, w_kv, b_kv_half, *, embed_dim, current_frame, tn=None):
    """x: (n, b*t, d) exactly like the PyTorch forward input; returns (n, b*t//2, d)."""
    n, bt, d = x.shape
    t = current_frame
    t2 = t // 2
    b = bt // t
    assert b * t == bt and d == embed_dim and t2 * 2 == t
    # Lane-dense blocks require the flattened frame*dim extents to be 128-lane aligned
    # (true for d=32, t=8 here and for any realistic embed_dim that is a multiple of 128).
    assert (t * d) % 128 == 0 and (t2 * d) % 128 == 0

    f32 = jnp.float32
    scale = float(embed_dim) ** (-0.5)
    w_q = jnp.asarray(w_q, f32)                  # (t2, t)  pool_q.weight
    w_kv = jnp.asarray(w_kv, f32)                # (t, t)   pool_kv.weight
    b_q = jnp.asarray(b_q, f32)                  # (t2,)    pool_q_bias
    b_kv_half = jnp.asarray(b_kv_half, f32)      # (t2,)    pool_kv_bias (applies to v only)

    # Constant fused mixer A: (t*d, 3*t2*d) with A[ti*d+i, (blk*t2+s)*d+i] = W[s, ti].
    # Size is independent of tn (no O(tn^2) zero blocks); under jit it is built once per
    # compiled shape, and its BlockSpec index is grid-constant so it is DMA'd only once.
    eye_d = jnp.eye(d, dtype=f32)

    def mix(w):                                  # (f, t) -> (t*d, f*d)
        return jnp.einsum('st,ij->tisj', w, eye_d).reshape(t * d, w.shape[0] * d)

    a = jnp.concatenate([mix(w_q * scale),       # q block: scale folded into the weights
                         mix(w_kv[:t2, :]),      # k block: zero bias by module construction
                         mix(w_kv[t2:, :])],     # v block
                        axis=1)
    a = a.astype(x.dtype)                        # bf16 x -> bf16 mixer (MXU input), f32 acc

    # Bias row (1, 3*t2*d): [scale*b_q per-frame, zeros (k), b_kv_half per-frame].  Kept f32.
    bias_row = jnp.concatenate([
        jnp.repeat(b_q * scale, d),
        jnp.zeros((t2 * d,), f32),
        jnp.repeat(b_kv_half, d),
    ]).reshape(1, 3 * t2 * d)

    # Lane-dense, zero-copy view of x: column index (bi*t + ti)*d + dd.
    x_flat = x.reshape(n, b * t * d)

    sublane = 16 if x.dtype == jnp.bfloat16 else 8   # bf16 native sublane tile is 16
    if tn is None:
        tn = _pick_tn(n, b, sublane)
    assert n % tn == 0

    grid = (b, n // tn)
    kernel = functools.partial(_attn_pool_kernel, t2=t2, d=d)

    out2d = pl.pallas_call(
        kernel,
        out_shape=jax.ShapeDtypeStruct((n, b * t2 * d), x.dtype),
        grid_spec=pltpu.PrefetchScalarGridSpec(
            num_scalar_prefetch=0,
            grid=grid,
            in_specs=[
                # x: lane-dense (tn, t*d) block = token tile ni, all frames of batch bi.
                pl.BlockSpec((tn, t * d), lambda bi, ni: (ni, bi)),
                # Mixer + bias: constant block index -> fetched once, reused every step.
                pl.BlockSpec((t * d, 3 * t2 * d), lambda bi, ni: (0, 0)),
                pl.BlockSpec((1, 3 * t2 * d), lambda bi, ni: (0, 0)),
            ],
            out_specs=pl.BlockSpec((tn, t2 * d), lambda bi, ni: (ni, bi)),
        ),
        compiler_params=pltpu.CompilerParams(
            dimension_semantics=("parallel", "parallel"),
            vmem_limit_bytes=32 * 1024 * 1024,   # explicit and v7x-safe (64 MiB physical VMEM)
        ),
    )(x_flat, a, bias_row)

    # Contiguous reshape only -- no HBM transpose on either the input or the output.
    return out2d.reshape(n, b * t2, d)


def _reference(x, w_q, b_q, w_kv, b_kv_half, *, embed_dim, current_frame):
    """Pure-JAX reference mirroring the PyTorch forward."""
    n, bt, d = x.shape
    t = current_frame
    t2 = t // 2
    b = bt // t
    xr = x.reshape(n, b, t, d).transpose(1, 0, 3, 2)                 # (b, n, d, t)
    b_kv = jnp.concatenate([jnp.zeros_like(b_kv_half), b_kv_half])
    q = xr @ w_q.T + b_q                                             # (b, n, d, t2)
    kv = xr @ w_kv.T + b_kv                                          # (b, n, d, t)
    k, v = kv[..., :t2], kv[..., t2:]
    q = q * (float(embed_dim) ** (-0.5))
    attn = jax.nn.softmax(jnp.swapaxes(q, -2, -1) @ k, axis=-1)      # (b, n, t2, t2)
    out = jnp.swapaxes(q, -2, -1) + attn @ jnp.swapaxes(v, -2, -1)   # (b, n, t2, d)
    return out.transpose(1, 0, 2, 3).reshape(n, b * t2, d)


if __name__ == "__main__":
    # Small shapes consistent with the module: embed_dim d=32, frames t=8, batch b=2, tokens n=16.
    embed_dim = 32
    current_frame = 8
    b, n = 2, 16
    t2 = current_frame // 2

    key = jax.random.PRNGKey(0)
    kx, kwq, kwkv, kbq, kbkv = jax.random.split(key, 5)

    x = jax.random.normal(kx, (n, b * current_frame, embed_dim), dtype=jnp.float32)
    # Parameter shapes from __init__ (deterministic synthetic init):
    w_q = 0.1 * jax.random.normal(kwq, (t2, current_frame), dtype=jnp.float32)               # pool_q.weight
    w_kv = 0.1 * jax.random.normal(kwkv, (current_frame, current_frame), dtype=jnp.float32)  # pool_kv.weight
    b_q = 0.1 * jax.random.normal(kbq, (t2,), dtype=jnp.float32)                             # pool_q_bias
    b_kv_half = 0.1 * jax.random.normal(kbkv, (t2,), dtype=jnp.float32)                      # pool_kv_bias

    ref = _reference(x, w_q, b_q, w_kv, b_kv_half,
                     embed_dim=embed_dim, current_frame=current_frame)

    # f32 path.  Softmax now uses the exact divide; the residual tolerance covers the TPU
    # default matmul precision of the pure-JAX reference, not any in-kernel approximation.
    out = temporal_pooling_attn(x, w_q, b_q, w_kv, b_kv_half,
                                embed_dim=embed_dim, current_frame=current_frame)
    out = jax.block_until_ready(out)
    assert out.shape == (n, b * t2, embed_dim), out.shape
    np.testing.assert_allclose(np.asarray(out), np.asarray(ref), rtol=2e-3, atol=2e-3)

    # bf16 storage path (v6e/v7x roofline win: halves the dominant x read stream; the kernel
    # still accumulates the MXU projection in f32 and runs the softmax in f32).
    out_bf16 = temporal_pooling_attn(x.astype(jnp.bfloat16), w_q, b_q, w_kv, b_kv_half,
                                     embed_dim=embed_dim, current_frame=current_frame)
    out_bf16 = jax.block_until_ready(out_bf16)
    np.testing.assert_allclose(np.asarray(jnp.asarray(out_bf16, jnp.float32)), np.asarray(ref),
                               rtol=3e-2, atol=3e-2)

    print("KERNEL_OK")
</pallas_src>

<mosaic_0001>
module attributes {stable_mosaic.version = 11 : i64} {
  func.func @_attn_pool_kernel(%arg0: i32, %arg1: i32, %arg2: memref<16x256xf32, #tpu.memory_space<vmem>>, %arg3: memref<256x384xf32, #tpu.memory_space<vmem>>, %arg4: memref<1x384xf32, #tpu.memory_space<vmem>>, %arg5: memref<16x128xf32, #tpu.memory_space<vmem>>) attributes {dimension_semantics = [#tpu.dimension_semantics<parallel>, #tpu.dimension_semantics<parallel>], iteration_bounds = array<i64: 2, 1>, scalar_prefetch = 0 : i64, scratch_operands = 0 : i64, tpu.core_type = #tpu.core_type<tc>, window_params = [{transform_indices = @transform_0, window_bounds = array<i64: 16, 256>}, {pipeline_mode = #tpu.pipeline_mode<synchronous>, transform_indices = @transform_1, window_bounds = array<i64: 256, 384>}, {pipeline_mode = #tpu.pipeline_mode<synchronous>, transform_indices = @transform_2, window_bounds = array<i64: 1, 384>}, {transform_indices = @transform_3, window_bounds = array<i64: 16, 128>}]} {
    %c0 = arith.constant 0 : index
    %c0_0 = arith.constant 0 : index
    %0 = vector.load %arg2[%c0, %c0_0] : memref<16x256xf32, #tpu.memory_space<vmem>>, vector<16x256xf32>
    %c0_1 = arith.constant 0 : index
    %c0_2 = arith.constant 0 : index
    %1 = vector.load %arg3[%c0_1, %c0_2] : memref<256x384xf32, #tpu.memory_space<vmem>>, vector<256x384xf32>
    %cst = arith.constant dense<0.000000e+00> : vector<16x384xf32>
    %2 = tpu.matmul %0, %1, %cst {dimension_numbers = #tpu.dot_dimension_numbers<[1], [0], [0], [1], [0, 0, 1, 1], [], []>} : vector<16x256xf32>, vector<256x384xf32>, vector<16x384xf32> -> vector<16x384xf32>
    %c0_3 = arith.constant 0 : index
    %c0_4 = arith.constant 0 : index
    %3 = vector.load %arg4[%c0_3, %c0_4] : memref<1x384xf32, #tpu.memory_space<vmem>>, vector<1x384xf32>
    %4 = vector.broadcast %3 : vector<1x384xf32> to vector<16x384xf32>
    %5 = arith.addf %2, %4 : vector<16x384xf32>
    %6 = vector.extract_strided_slice %5 {offsets = [0, 0], sizes = [16, 32], strides = [1, 1]} : vector<16x384xf32> to vector<16x32xf32>
    %7 = vector.extract_strided_slice %5 {offsets = [0, 32], sizes = [16, 32], strides = [1, 1]} : vector<16x384xf32> to vector<16x32xf32>
    %8 = vector.extract_strided_slice %5 {offsets = [0, 64], sizes = [16, 32], strides = [1, 1]} : vector<16x384xf32> to vector<16x32xf32>
    %9 = vector.extract_strided_slice %5 {offsets = [0, 96], sizes = [16, 32], strides = [1, 1]} : vector<16x384xf32> to vector<16x32xf32>
    %10 = vector.extract_strided_slice %5 {offsets = [0, 128], sizes = [16, 32], strides = [1, 1]} : vector<16x384xf32> to vector<16x32xf32>
    %11 = vector.extract_strided_slice %5 {offsets = [0, 160], sizes = [16, 32], strides = [1, 1]} : vector<16x384xf32> to vector<16x32xf32>
    %12 = vector.extract_strided_slice %5 {offsets = [0, 192], sizes = [16, 32], strides = [1, 1]} : vector<16x384xf32> to vector<16x32xf32>
    %13 = vector.extract_strided_slice %5 {offsets = [0, 224], sizes = [16, 32], strides = [1, 1]} : vector<16x384xf32> to vector<16x32xf32>
    %14 = vector.extract_strided_slice %5 {offsets = [0, 256], sizes = [16, 32], strides = [1, 1]} : vector<16x384xf32> to vector<16x32xf32>
    %15 = vector.extract_strided_slice %5 {offsets = [0, 288], sizes = [16, 32], strides = [1, 1]} : vector<16x384xf32> to vector<16x32xf32>
    %16 = vector.extract_strided_slice %5 {offsets = [0, 320], sizes = [16, 32], strides = [1, 1]} : vector<16x384xf32> to vector<16x32xf32>
    %17 = vector.extract_strided_slice %5 {offsets = [0, 352], sizes = [16, 32], strides = [1, 1]} : vector<16x384xf32> to vector<16x32xf32>
    %18 = arith.mulf %6, %10 : vector<16x32xf32>
    %cst_5 = arith.constant dense<0.000000e+00> : vector<16xf32>
    %19 = vector.multi_reduction <add>, %18, %cst_5 [1] : vector<16x32xf32> to vector<16xf32>
    %20 = vector.shape_cast %19 : vector<16xf32> to vector<16x1xf32>
    %21 = arith.mulf %6, %11 : vector<16x32xf32>
    %cst_6 = arith.constant dense<0.000000e+00> : vector<16xf32>
    %22 = vector.multi_reduction <add>, %21, %cst_6 [1] : vector<16x32xf32> to vector<16xf32>
    %23 = vector.shape_cast %22 : vector<16xf32> to vector<16x1xf32>
    %24 = arith.mulf %6, %12 : vector<16x32xf32>
    %cst_7 = arith.constant dense<0.000000e+00> : vector<16xf32>
    %25 = vector.multi_reduction <add>, %24, %cst_7 [1] : vector<16x32xf32> to vector<16xf32>
    %26 = vector.shape_cast %25 : vector<16xf32> to vector<16x1xf32>
    %27 = arith.mulf %6, %13 : vector<16x32xf32>
    %cst_8 = arith.constant dense<0.000000e+00> : vector<16xf32>
    %28 = vector.multi_reduction <add>, %27, %cst_8 [1] : vector<16x32xf32> to vector<16xf32>
    %29 = vector.shape_cast %28 : vector<16xf32> to vector<16x1xf32>
    %30 = arith.maximumf %20, %23 : vector<16x1xf32>
    %31 = arith.maximumf %30, %26 : vector<16x1xf32>
    %32 = arith.maximumf %31, %29 : vector<16x1xf32>
    %33 = arith.subf %20, %32 : vector<16x1xf32>
    %34 = math.exp %33 : vector<16x1xf32>
    %35 = arith.subf %23, %32 : vector<16x1xf32>
    %36 = math.exp %35 : vector<16x1xf32>
    %37 = arith.subf %26, %32 : vector<16x1xf32>
    %38 = math.exp %37 : vector<16x1xf32>
    %39 = arith.subf %29, %32 : vector<16x1xf32>
    %40 = math.exp %39 : vector<16x1xf32>
    %41 = arith.addf %34, %36 : vector<16x1xf32>
    %42 = arith.addf %41, %38 : vector<16x1xf32>
    %43 = arith.addf %42, %40 : vector<16x1xf32>
    %cst_9 = arith.constant 1.000000e+00 : f32
    %44 = vector.broadcast %cst_9 : f32 to vector<16x1xf32>
    %45 = arith.divf %44, %43 : vector<16x1xf32>
    %46 = arith.mulf %34, %45 : vector<16x1xf32>
    %47 = vector.broadcast %46 : vector<16x1xf32> to vector<16x32xf32>
    %48 = arith.mulf %47, %14 : vector<16x32xf32>
    %49 = arith.addf %6, %48 : vector<16x32xf32>
    %50 = arith.mulf %36, %45 : vector<16x1xf32>
    %51 = vector.broadcast %50 : vector<16x1xf32> to vector<16x32xf32>
    %52 = arith.mulf %51, %15 : vector<16x32xf32>
    %53 = arith.addf %49, %52 : vector<16x32xf32>
    %54 = arith.mulf %38, %45 : vector<16x1xf32>
    %55 = vector.broadcast %54 : vector<16x1xf32> to vector<16x32xf32>
    %56 = arith.mulf %55, %16 : vector<16x32xf32>
    %57 = arith.addf %53, %56 : vector<16x32xf32>
    %58 = arith.mulf %40, %45 : vector<16x1xf32>
    %59 = vector.broadcast %58 : vector<16x1xf32> to vector<16x32xf32>
    %60 = arith.mulf %59, %17 : vector<16x32xf32>
    %61 = arith.addf %57, %60 : vector<16x32xf32>
    %62 = arith.mulf %7, %10 : vector<16x32xf32>
    %cst_10 = arith.constant dense<0.000000e+00> : vector<16xf32>
    %63 = vector.multi_reduction <add>, %62, %cst_10 [1] : vector<16x32xf32> to vector<16xf32>
    %64 = vector.shape_cast %63 : vector<16xf32> to vector<16x1xf32>
    %65 = arith.mulf %7, %11 : vector<16x32xf32>
    %cst_11 = arith.constant dense<0.000000e+00> : vector<16xf32>
    %66 = vector.multi_reduction <add>, %65, %cst_11 [1] : vector<16x32xf32> to vector<16xf32>
    %67 = vector.shape_cast %66 : vector<16xf32> to vector<16x1xf32>
    %68 = arith.mulf %7, %12 : vector<16x32xf32>
    %cst_12 = arith.constant dense<0.000000e+00> : vector<16xf32>
    %69 = vector.multi_reduction <add>, %68, %cst_12 [1] : vector<16x32xf32> to vector<16xf32>
    %70 = vector.shape_cast %69 : vector<16xf32> to vector<16x1xf32>
    %71 = arith.mulf %7, %13 : vector<16x32xf32>
    %cst_13 = arith.constant dense<0.000000e+00> : vector<16xf32>
    %72 = vector.multi_reduction <add>, %71, %cst_13 [1] : vector<16x32xf32> to vector<16xf32>
    %73 = vector.shape_cast %72 : vector<16xf32> to vector<16x1xf32>
    %74 = arith.maximumf %64, %67 : vector<16x1xf32>
    %75 = arith.maximumf %74, %70 : vector<16x1xf32>
    %76 = arith.maximumf %75, %73 : vector<16x1xf32>
    %77 = arith.subf %64, %76 : vector<16x1xf32>
    %78 = math.exp %77 : vector<16x1xf32>
    %79 = arith.subf %67, %76 : vector<16x1xf32>
    %80 = math.exp %79 : vector<16x1xf32>
    %81 = arith.subf %70, %76 : vector<16x1xf32>
    %82 = math.exp %81 : vector<16x1xf32>
    %83 = arith.subf %73, %76 : vector<16x1xf32>
    %84 = math.exp %83 : vector<16x1xf32>
    %85 = arith.addf %78, %80 : vector<16x1xf32>
    %86 = arith.addf %85, %82 : vector<16x1xf32>
    %87 = arith.addf %86, %84 : vector<16x1xf32>
    %cst_14 = arith.constant 1.000000e+00 : f32
    %88 = vector.broadcast %cst_14 : f32 to vector<16x1xf32>
    %89 = arith.divf %88, %87 : vector<16x1xf32>
    %90 = arith.mulf %78, %89 : vector<16x1xf32>
    %91 = vector.broadcast %90 : vector<16x1xf32> to vector<16x32xf32>
    %92 = arith.mulf %91, %14 : vector<16x32xf32>
    %93 = arith.addf %7, %92 : vector<16x32xf32>
    %94 = arith.mulf %80, %89 : vector<16x1xf32>
    %95 = vector.broadcast %94 : vector<16x1xf32> to vector<16x32xf32>
    %96 = arith.mulf %95, %15 : vector<16x32xf32>
    %97 = arith.addf %93, %96 : vector<16x32xf32>
    %98 = arith.mulf %82, %89 : vector<16x1xf32>
    %99 = vector.broadcast %98 : vector<16x1xf32> to vector<16x32xf32>
    %100 = arith.mulf %99, %16 : vector<16x32xf32>
    %101 = arith.addf %97, %100 : vector<16x32xf32>
    %102 = arith.mulf %84, %89 : vector<16x1xf32>
    %103 = vector.broadcast %102 : vector<16x1xf32> to vector<16x32xf32>
    %104 = arith.mulf %103, %17 : vector<16x32xf32>
    %105 = arith.addf %101, %104 : vector<16x32xf32>
    %106 = arith.mulf %8, %10 : vector<16x32xf32>
    %cst_15 = arith.constant dense<0.000000e+00> : vector<16xf32>
    %107 = vector.multi_reduction <add>, %106, %cst_15 [1] : vector<16x32xf32> to vector<16xf32>
    %108 = vector.shape_cast %107 : vector<16xf32> to vector<16x1xf32>
    %109 = arith.mulf %8, %11 : vector<16x32xf32>
    %cst_16 = arith.constant dense<0.000000e+00> : vector<16xf32>
    %110 = vector.multi_reduction <add>, %109, %cst_16 [1] : vector<16x32xf32> to vector<16xf32>
    %111 = vector.shape_cast %110 : vector<16xf32> to vector<16x1xf32>
    %112 = arith.mulf %8, %12 : vector<16x32xf32>
    %cst_17 = arith.constant dense<0.000000e+00> : vector<16xf32>
    %113 = vector.multi_reduction <add>, %112, %cst_17 [1] : vector<16x32xf32> to vector<16xf32>
    %114 = vector.shape_cast %113 : vector<16xf32> to vector<16x1xf32>
    %115 = arith.mulf %8, %13 : vector<16x32xf32>
    %cst_18 = arith.constant dense<0.000000e+00> : vector<16xf32>
    %116 = vector.multi_reduction <add>, %115, %cst_18 [1] : vector<16x32xf32> to vector<16xf32>
    %117 = vector.shape_cast %116 : vector<16xf32> to vector<16x1xf32>
    %118 = arith.maximumf %108, %111 : vector<16x1xf32>
    %119 = arith.maximumf %118, %114 : vector<16x1xf32>
    %120 = arith.maximumf %119, %117 : vector<16x1xf32>
    %121 = arith.subf %108, %120 : vector<16x1xf32>
    %122 = math.exp %121 : vector<16x1xf32>
    %123 = arith.subf %111, %120 : vector<16x1xf32>
    %124 = math.exp %123 : vector<16x1xf32>
    %125 = arith.subf %114, %120 : vector<16x1xf32>
    %126 = math.exp %125 : vector<16x1xf32>
    %127 = arith.subf %117, %120 : vector<16x1xf32>
    %128 = math.exp %127 : vector<16x1xf32>
    %129 = arith.addf %122, %124 : vector<16x1xf32>
    %130 = arith.addf %129, %126 : vector<16x1xf32>
    %131 = arith.addf %130, %128 : vector<16x1xf32>
    %cst_19 = arith.constant 1.000000e+00 : f32
    %132 = vector.broadcast %cst_19 : f32 to vector<16x1xf32>
    %133 = arith.divf %132, %131 : vector<16x1xf32>
    %134 = arith.mulf %122, %133 : vector<16x1xf32>
    %135 = vector.broadcast %134 : vector<16x1xf32> to vector<16x32xf32>
    %136 = arith.mulf %135, %14 : vector<16x32xf32>
    %137 = arith.addf %8, %136 : vector<16x32xf32>
    %138 = arith.mulf %124, %133 : vector<16x1xf32>
    %139 = vector.broadcast %138 : vector<16x1xf32> to vector<16x32xf32>
    %140 = arith.mulf %139, %15 : vector<16x32xf32>
    %141 = arith.addf %137, %140 : vector<16x32xf32>
    %142 = arith.mulf %126, %133 : vector<16x1xf32>
    %143 = vector.broadcast %142 : vector<16x1xf32> to vector<16x32xf32>
    %144 = arith.mulf %143, %16 : vector<16x32xf32>
    %145 = arith.addf %141, %144 : vector<16x32xf32>
    %146 = arith.mulf %128, %133 : vector<16x1xf32>
    %147 = vector.broadcast %146 : vector<16x1xf32> to vector<16x32xf32>
    %148 = arith.mulf %147, %17 : vector<16x32xf32>
    %149 = arith.addf %145, %148 : vector<16x32xf32>
    %150 = arith.mulf %9, %10 : vector<16x32xf32>
    %cst_20 = arith.constant dense<0.000000e+00> : vector<16xf32>
    %151 = vector.multi_reduction <add>, %150, %cst_20 [1] : vector<16x32xf32> to vector<16xf32>
    %152 = vector.shape_cast %151 : vector<16xf32> to vector<16x1xf32>
    %153 = arith.mulf %9, %11 : vector<16x32xf32>
    %cst_21 = arith.constant dense<0.000000e+00> : vector<16xf32>
    %154 = vector.multi_reduction <add>, %153, %cst_21 [1] : vector<16x32xf32> to vector<16xf32>
    %155 = vector.shape_cast %154 : vector<16xf32> to vector<16x1xf32>
    %156 = arith.mulf %9, %12 : vector<16x32xf32>
    %cst_22 = arith.constant dense<0.000000e+00> : vector<16xf32>
    %157 = vector.multi_reduction <add>, %156, %cst_22 [1] : vector<16x32xf32> to vector<16xf32>
    %158 = vector.shape_cast %157 : vector<16xf32> to vector<16x1xf32>
    %159 = arith.mulf %9, %13 : vector<16x32xf32>
    %cst_23 = arith.constant dense<0.000000e+00> : vector<16xf32>
    %160 = vector.multi_reduction <add>, %159, %cst_23 [1] : vector<16x32xf32> to vector<16xf32>
    %161 = vector.shape_cast %160 : vector<16xf32> to vector<16x1xf32>
    %162 = arith.maximumf %152, %155 : vector<16x1xf32>
    %163 = arith.maximumf %162, %158 : vector<16x1xf32>
    %164 = arith.maximumf %163, %161 : vector<16x1xf32>
    %165 = arith.subf %152, %164 : vector<16x1xf32>
    %166 = math.exp %165 : vector<16x1xf32>
    %167 = arith.subf %155, %164 : vector<16x1xf32>
    %168 = math.exp %167 : vector<16x1xf32>
    %169 = arith.subf %158, %164 : vector<16x1xf32>
    %170 = math.exp %169 : vector<16x1xf32>
    %171 = arith.subf %161, %164 : vector<16x1xf32>
    %172 = math.exp %171 : vector<16x1xf32>
    %173 = arith.addf %166, %168 : vector<16x1xf32>
    %174 = arith.addf %173, %170 : vector<16x1xf32>
    %175 = arith.addf %174, %172 : vector<16x1xf32>
    %cst_24 = arith.constant 1.000000e+00 : f32
    %176 = vector.broadcast %cst_24 : f32 to vector<16x1xf32>
    %177 = arith.divf %176, %175 : vector<16x1xf32>
    %178 = arith.mulf %166, %177 : vector<16x1xf32>
    %179 = vector.broadcast %178 : vector<16x1xf32> to vector<16x32xf32>
    %180 = arith.mulf %179, %14 : vector<16x32xf32>
    %181 = arith.addf %9, %180 : vector<16x32xf32>
    %182 = arith.mulf %168, %177 : vector<16x1xf32>
    %183 = vector.broadcast %182 : vector<16x1xf32> to vector<16x32xf32>
    %184 = arith.mulf %183, %15 : vector<16x32xf32>
    %185 = arith.addf %181, %184 : vector<16x32xf32>
    %186 = arith.mulf %170, %177 : vector<16x1xf32>
    %187 = vector.broadcast %186 : vector<16x1xf32> to vector<16x32xf32>
    %188 = arith.mulf %187, %16 : vector<16x32xf32>
    %189 = arith.addf %185, %188 : vector<16x32xf32>
    %190 = arith.mulf %172, %177 : vector<16x1xf32>
    %191 = vector.broadcast %190 : vector<16x1xf32> to vector<16x32xf32>
    %192 = arith.mulf %191, %17 : vector<16x32xf32>
    %193 = arith.addf %189, %192 : vector<16x32xf32>
    %194 = tpu.concatenate %61, %105, %149, %193 in 1 : vector<16x32xf32>, vector<16x32xf32>, vector<16x32xf32>, vector<16x32xf32> -> vector<16x128xf32>
    %c0_25 = arith.constant 0 : index
    %c0_26 = arith.constant 0 : index
    %195 = vector.load %arg5[%c0_25, %c0_26] : memref<16x128xf32, #tpu.memory_space<vmem>>, vector<16x128xf32>
    tpu.vector_store %arg5[%c0_25, %c0_26], %194 {strides = array<i32>} : memref<16x128xf32, #tpu.memory_space<vmem>>, vector<16x128xf32>,
    return
  }
  func.func @transform_0(%arg0: i32, %arg1: i32) -> (i32, i32) {
    %c0_i32 = arith.constant 0 : i32
    return %arg1, %arg0 : i32, i32
  }
  func.func @transform_1(%arg0: i32, %arg1: i32) -> (i32, i32) {
    %c0_i32 = arith.constant 0 : i32
    %c0_i32_0 = arith.constant 0 : i32
    %c0_i32_1 = arith.constant 0 : i32
    return %c0_i32, %c0_i32_0 : i32, i32
  }
  func.func @transform_2(%arg0: i32, %arg1: i32) -> (i32, i32) {
    %c0_i32 = arith.constant 0 : i32
    %c0_i32_0 = arith.constant 0 : i32
    %c0_i32_1 = arith.constant 0 : i32
    return %c0_i32, %c0_i32_0 : i32, i32
  }
  func.func @transform_3(%arg0: i32, %arg1: i32) -> (i32, i32) {
    %c0_i32 = arith.constant 0 : i32
    return %arg1, %arg0 : i32, i32
  }
}

</mosaic_0001>

<bundles_post_ra>
// kernel: temporal_pooling_attn.1
= control target key start
LH: loop header
LB: loop body
LE: loop exit
PB: predicated region body
PF: predicated region fallthrough
CT: control target
= control target key end

     0   :  { %s1502_s12 = smov 0   ;;  %s1504_s13 = smov 0   ;;  %s2134_s0 = inlined_call_operand.vmem [shape: f32[16,512], index: 0, kind: input, shape index: {}]   ;;  %s2135_s1 = inlined_call_operand.vmem [shape: f32[256,384], index: 1, kind: input, shape index: {}]   ;;  %s2136_s2 = inlined_call_operand.vmem [shape: f32[1,384], index: 2, kind: input, shape index: {}]   ;;  %s2137_s3 = inlined_call_operand.vmem [shape: f32[16,256], index: 3, kind: output, shape index: {}]  }
   0x1   :  { %s1506_s14 = smov 0   ;;  %s1508_s15 = smov 0  }
   0x2   :  { %s1510_s16 = smov 0  }
   0x3 LB: > { %s25_s17 = sadd.s32 1, %s1473_s15  ;;  %s1167_s18 = sadd.s32 4294967295, %s1477_s16   ;;  %s1477_s16 = sphi %s1510_s16, %s13_s16   ;;  %s1473_s15 = sphi %s1508_s15, %s2142_s15   ;;  %s1469_s14 = sphi %s1506_s14, %s2141_s14   ;;  %s1465_s13 = sphi %s1504_s13, %s2140_s13   ;;  %s1461_s12 = sphi %s1502_s12, %s2139_s12  }
   0x4   : > { %p27_p0 = scmp.ge.s32.totalorder %s25_s17, 2  ;;  %p41_p1 = scmp.ne.s32.totalorder %s1465_s13, %s1461_s12 }
   0x5   : > { %p42_p2 = scmp.eq.s32.totalorder %s1477_s16, 0  ;;  %p115_p4 = scmp.eq.s32.totalorder %s1167_s18, 1 }
   0x6   : > { %s2144_s17 = smov (%p27_p0, %s25_s17), 0  ;;  %s34_s20 = sadd.s32 1, %s1465_s13 }
   0x7   : > { %p43_p3 = por %p42_p2, %p41_p1  ;;  %s30_s19 = ssub.s32 %s1473_s15, %s2144_s17 }
   0x8   : > { %p32_p5 = scmp.eq.s32.totalorder %s30_s19, 0  ;;  %p1537_p6 = por %p115_p4, %p41_p1 }
   0x9   : > { %p1170_p7 = scmp.ge.s32.totalorder %s1477_s16, 2 }
   0xa   : > { %s1542_s22 = scalar_select %p32_p5, %s1465_s13, %s34_s20  }
   0xb   : > { %143 = sbr.rel (%p1170_p7) target bundleno = 25 (0x19), region = 24 }
  0x12   : > { %146 = sbr.rel (!%p43_p3) target bundleno = 25 (0x19), region = 28  ;;  %s148_s23 = sand.u32 (%p43_p3), 1, %s1465_s13  }
  0x13   : > { %s1181_s24 = sshll.u32 (%p43_p3), %s1473_s15, 4  ;;  %s1171_s25 = sshll.u32 (%p43_p3), %s148_s23, 5 }
  0x14   : > { %s156_s28 = scalar_lea.vmem (%p43_p3), %s2134_s0, %s1181_s24  ;;  %s150_s29 = scalar_lea.vmem (%p43_p3), [#allocation2], %s1171_s25 }
  0x15   : > { %v169_v0 = vld [vmem:[%s156_s28] sm:$0xff] (%p43_p3)  ;;  %v171_v1 = vld [vmem:[%s156_s28 + $0x8] sm:$0xff] (%p43_p3) }
  0x16   : > { %v173_v2 = vld [vmem:[%s156_s28 + $0x20] sm:$0xff] (%p43_p3)  ;;  %170 = vst [vmem:[%s150_s29] sm:$0xff] (%p43_p3), %v169_v0  ;;  %172 = vst [vmem:[%s150_s29 + $0x8] sm:$0xff] (%p43_p3), %v171_v1  ;;  %v175_v3 = vld [vmem:[%s156_s28 + $0x28] sm:$0xff] (%p43_p3) }
  0x17   : > { %174 = vst [vmem:[%s150_s29 + $0x10] sm:$0xff] (%p43_p3), %v173_v2  ;;  %176 = vst [vmem:[%s150_s29 + $0x18] sm:$0xff] (%p43_p3), %v175_v3 }
  0x19 PF: > { %p1174_p8 = scmp.ge.s32.totalorder %s1477_s16, 1  ;;  %p181_p9 = scmp.lt.s32.totalorder %s1477_s16, 3 }
  0x1b   : > { %p182_p10 = pnand %p1174_p8, %p181_p9 }
  0x1c   : > { %v218_v4 = vld [vmem:[%s2135_s1 + $0x8] sm:$0xff] (!%p182_p10)  ;;  %v221_v5 = vld [vmem:[%s2135_s1 + $0x20] sm:$0xff] (!%p182_p10)  ;;  %v220_v8 = vld [vmem:[%s2135_s1 + $0x18] sm:$0xff] (!%p182_p10)  ;;  %s188_s28 = sand.u32 (!%p182_p10), 1, %s1461_s12   ;;  %s1479_s8 = smov (!%p182_p10), 64   ;;  %vm484_vm0 = vcmask (!%p182_p10), 261120  }
  0x1d   : > { %185 = sbr.rel (%p182_p10) target bundleno = 1011 (0x3f3), region = 51  ;;  %v217_v6 = vld [vmem:[%s2135_s1] sm:$0xff] (!%p182_p10)  ;;  %v1220_v7 = vpack.c.bf16 (!%p182_p10), %v221_v5, %v218_v4  ;;  %v224_v9 = vld [vmem:[%s2135_s1 + $0x38] sm:$0xff] (!%p182_p10)  ;;  %v227_v10 = vld [vmem:[%s2135_s1 + $0x50] sm:$0xff] (!%p182_p10)  ;;  %s1175_s10 = sshll.u32 (!%p182_p10), %s188_s28, 5  ;;  %vm1041_vm1 = vcmask (!%p182_p10), 523264  }
  0x1e   : > { %v1222_v11 = vpack.c.bf16 (!%p182_p10), %v220_v8, %v217_v6  ;;  %v1224_v12 = vpack.c.bf16 (!%p182_p10), %v227_v10, %v224_v9  ;;  %v223_v13 = vld [vmem:[%s2135_s1 + $0x30] sm:$0xff] (!%p182_p10)  ;;  %v226_v14 = vld [vmem:[%s2135_s1 + $0x48] sm:$0xff] (!%p182_p10)  ;;  %v233_v16 = vld [vmem:[%s2135_s1 + $0x80] sm:$0xff] (!%p182_p10)  ;;  %s1639_s5 = scalar_lea.vmem (!%p182_p10), [#allocation2], %s1175_s10  ;;  %s1480_s9 = smov (!%p182_p10), 96   ;;  %vm1044_vm2 = vcmask (!%p182_p10), 785408  }
  0x1f   : > { %v230_v15 = vld [vmem:[%s2135_s1 + $0x68] sm:$0xff] (!%p182_p10)  ;;  %1221 = vmatprep.subr.bf16.mxu0 (!%p182_p10), %v1220_v7  ;;  %v1226_v17 = vpack.c.bf16 (!%p182_p10), %v226_v14, %v223_v13  ;;  %v229_v19 = vld [vmem:[%s2135_s1 + $0x60] sm:$0xff] (!%p182_p10)  ;;  %v232_v20 = vld [vmem:[%s2135_s1 + $0x78] sm:$0xff] (!%p182_p10)  ;;  %s1481_s25 = smov (!%p182_p10), 32  }
  0x20   : > { %1223 = vmatpush1.bf16.msra.mxu0 (!%p182_p10), %v1222_v11  ;;  %v1228_v18 = vpack.c.bf16 (!%p182_p10), %v233_v16, %v230_v15  ;;  %v236_v21 = vld [vmem:[%s2135_s1 + $0x98] sm:$0xff] (!%p182_p10)  ;;  %v239_v22 = vld [vmem:[%s2135_s1 + $0xb0] sm:$0xff] (!%p182_p10)  ;;  %v1230_v23 = vpack.c.bf16 (!%p182_p10), %v232_v20, %v229_v19  ;;  %v238_v26 = vld [vmem:[%s2135_s1 + $0xa8] sm:$0xff] (!%p182_p10) }
  0x21   : > { %1225 = vmatprep.subr.bf16.mxu0 (!%p182_p10), %v1224_v12  ;;  %v1232_v24 = vpack.c.bf16 (!%p182_p10), %v239_v22, %v236_v21  ;;  %v235_v25 = vld [vmem:[%s2135_s1 + $0x90] sm:$0xff] (!%p182_p10)  ;;  %v242_v27 = vld [vmem:[%s2135_s1 + $0xc8] sm:$0xff] (!%p182_p10)  ;;  %v245_v28 = vld [vmem:[%s2135_s1 + $0xe0] sm:$0xff] (!%p182_p10) }
  0x22   : > { %v1234_v29 = vpack.c.bf16 (!%p182_p10), %v238_v26, %v235_v25  ;;  %v1236_v30 = vpack.c.bf16 (!%p182_p10), %v245_v28, %v242_v27  ;;  %v241_v31 = vld [vmem:[%s2135_s1 + $0xc0] sm:$0xff] (!%p182_p10)  ;;  %v244_v32 = vld [vmem:[%s2135_s1 + $0xd8] sm:$0xff] (!%p182_p10)  ;;  %v251_v34 = vld [vmem:[%s2135_s1 + $0x110] sm:$0xff] (!%p182_p10) }
  0x23   : > { %v248_v33 = vld [vmem:[%s2135_s1 + $0xf8] sm:$0xff] (!%p182_p10)  ;;  %v1238_v35 = vpack.c.bf16 (!%p182_p10), %v244_v32, %v241_v31  ;;  %v247_v37 = vld [vmem:[%s2135_s1 + $0xf0] sm:$0xff] (!%p182_p10)  ;;  %v250_v38 = vld [vmem:[%s2135_s1 + $0x108] sm:$0xff] (!%p182_p10) }
  0x24   : > { %1227 = vmatpush1.bf16.msra.mxu0 %v1226_v17  ;;  %v1240_v36 = vpack.c.bf16 %v251_v34, %v248_v33  ;;  %v254_v39 = vld [vmem:[%s2135_s1 + $0x128] sm:$0xff]  ;;  %v257_v40 = vld [vmem:[%s2135_s1 + $0x140] sm:$0xff]  ;;  %v1242_v41 = vpack.c.bf16 %v250_v38, %v247_v37  ;;  %v256_v44 = vld [vmem:[%s2135_s1 + $0x138] sm:$0xff]  ;;  %s1178_s12 = sshll.u32 (%p1537_p6), %s1469_s14, 3 }
  0x25   : > { %1229 = vmatprep.subr.bf16.mxu0 %v1228_v18  ;;  %v1244_v42 = vpack.c.bf16 %v257_v40, %v254_v39  ;;  %v253_v43 = vld [vmem:[%s2135_s1 + $0x120] sm:$0xff]  ;;  %v214_v45 = vld [vmem:[%s1639_s5 + $0x8] sm:$0xff]  ;;  %v260_v46 = vld [vmem:[%s2135_s1 + $0x158] sm:$0xff]  ;;  %v315_v40 = vlaneseq  ;;  %s1060_s10 = scalar_lea.vmem (%p1537_p6), %s2137_s3, %s1178_s12 }
  0x26   : > { %v263_v47 = vld [vmem:[%s2135_s1 + $0x170] sm:$0xff]  ;;  %394 = vmatprep.mubr.f32.mxu0 %v214_v45  ;;  %471 = vmatprep.mubr.f32.mxu1 %v214_v45  ;;  %v1246_v48 = vpack.c.bf16 %v256_v44, %v253_v43  ;;  %v262_v51 = vld [vmem:[%s2135_s1 + $0x168] sm:$0xff]  ;;  %v269_v53 = vld [vmem:[%s2135_s1 + $0x1a0] sm:$0xff] }
  0x27   : > { %v1248_v49 = vpack.c.bf16 %v263_v47, %v260_v46  ;;  %v259_v50 = vld [vmem:[%s2135_s1 + $0x150] sm:$0xff]  ;;  %v266_v52 = vld [vmem:[%s2135_s1 + $0x188] sm:$0xff]  ;;  %v265_v56 = vld [vmem:[%s2135_s1 + $0x180] sm:$0xff] }
  0x28   : > { %1231 = vmatpush1.bf16.msra.mxu0 %v1230_v23  ;;  %v1250_v54 = vpack.c.bf16 %v262_v51, %v259_v50  ;;  %v1252_v55 = vpack.c.bf16 %v269_v53, %v266_v52  ;;  %v268_v57 = vld [vmem:[%s2135_s1 + $0x198] sm:$0xff]  ;;  %v275_v59 = vld [vmem:[%s2135_s1 + $0x1d0] sm:$0xff]  ;;  %v274_v63 = vld [vmem:[%s2135_s1 + $0x1c8] sm:$0xff] }
  0x29   : > { %1233 = vmatprep.subr.bf16.mxu0 %v1232_v24  ;;  %v272_v58 = vld [vmem:[%s2135_s1 + $0x1b8] sm:$0xff]  ;;  %v1254_v60 = vpack.c.bf16 %v268_v57, %v265_v56  ;;  %v271_v62 = vld [vmem:[%s2135_s1 + $0x1b0] sm:$0xff]  ;;  %v278_v0 = vld [vmem:[%s2135_s1 + $0x1e8] sm:$0xff] }
  0x2a   : > { %v1256_v61 = vpack.c.bf16 %v275_v59, %v272_v58  ;;  %v281_v1 = vld [vmem:[%s2135_s1 + $0x200] sm:$0xff]  ;;  %v1258_v2 = vpack.c.bf16 %v274_v63, %v271_v62  ;;  %v280_v5 = vld [vmem:[%s2135_s1 + $0x1f8] sm:$0xff]  ;;  %v287_v7 = vld [vmem:[%s2135_s1 + $0x230] sm:$0xff] }
  0x2b   : > { %v1260_v3 = vpack.c.bf16 %v281_v1, %v278_v0  ;;  %v277_v4 = vld [vmem:[%s2135_s1 + $0x1e0] sm:$0xff]  ;;  %v284_v6 = vld [vmem:[%s2135_s1 + $0x218] sm:$0xff]  ;;  %v283_v10 = vld [vmem:[%s2135_s1 + $0x210] sm:$0xff] }
  0x2c   : > { %1235 = vmatpush1.bf16.msra.mxu0 %v1234_v29  ;;  %v1262_v8 = vpack.c.bf16 %v280_v5, %v277_v4  ;;  %v1264_v9 = vpack.c.bf16 %v287_v7, %v284_v6  ;;  %v286_v11 = vld [vmem:[%s2135_s1 + $0x228] sm:$0xff]  ;;  %v293_v13 = vld [vmem:[%s2135_s1 + $0x260] sm:$0xff]  ;;  %v292_v17 = vld [vmem:[%s2135_s1 + $0x258] sm:$0xff] }
  0x2d   : > { %1237 = vmatprep.subr.bf16.mxu0 %v1236_v30  ;;  %v290_v12 = vld [vmem:[%s2135_s1 + $0x248] sm:$0xff]  ;;  %v1266_v14 = vpack.c.bf16 %v286_v11, %v283_v10  ;;  %v289_v16 = vld [vmem:[%s2135_s1 + $0x240] sm:$0xff]  ;;  %v296_v18 = vld [vmem:[%s2135_s1 + $0x278] sm:$0xff] }
  0x2e   : > { %v1268_v15 = vpack.c.bf16 %v293_v13, %v290_v12  ;;  %v299_v19 = vld [vmem:[%s2135_s1 + $0x290] sm:$0xff]  ;;  %v1270_v20 = vpack.c.bf16 %v292_v17, %v289_v16  ;;  %v298_v23 = vld [vmem:[%s2135_s1 + $0x288] sm:$0xff]  ;;  %v305_v25 = vld [vmem:[%s2135_s1 + $0x2c0] sm:$0xff] }
  0x2f   : > { %v1272_v21 = vpack.c.bf16 %v299_v19, %v296_v18  ;;  %v295_v22 = vld [vmem:[%s2135_s1 + $0x270] sm:$0xff]  ;;  %v302_v24 = vld [vmem:[%s2135_s1 + $0x2a8] sm:$0xff]  ;;  %v301_v28 = vld [vmem:[%s2135_s1 + $0x2a0] sm:$0xff] }
  0x30   : > { %1239 = vmatpush1.bf16.msra.mxu0 %v1238_v35  ;;  %v1274_v26 = vpack.c.bf16 %v298_v23, %v295_v22  ;;  %v1276_v27 = vpack.c.bf16 %v305_v25, %v302_v24  ;;  %v304_v29 = vld [vmem:[%s2135_s1 + $0x2b8] sm:$0xff]  ;;  %v311_v31 = vld [vmem:[%s2135_s1 + $0x2f0] sm:$0xff]  ;;  %v310_v35 = vld [vmem:[%s2135_s1 + $0x2e8] sm:$0xff] }
  0x31   : > { %1241 = vmatprep.subr.bf16.mxu0 %v1240_v36  ;;  %v308_v30 = vld [vmem:[%s2135_s1 + $0x2d8] sm:$0xff]  ;;  %v1278_v32 = vpack.c.bf16 %v304_v29, %v301_v28  ;;  %v307_v34 = vld [vmem:[%s2135_s1 + $0x2d0] sm:$0xff]  ;;  %v1751_v37 = vld [vmem:[%s1639_s5] sm:$0xff] }
  0x32   : > { %v1280_v33 = vpack.c.bf16 %v311_v31, %v308_v30  ;;  %v1282_v36 = vpack.c.bf16 %v310_v35, %v307_v34  ;;  %v1754_v38 = vld [vmem:[%s1639_s5 + $0x18] sm:$0xff]  ;;  %v1759_v39 = vld [vmem:[%s1639_s5 + $0x10] sm:$0xff]  ;;  %v270_v43 = vld [vmem:[%s2135_s1 + $0x1a8] sm:$0xff] }
  0x33   : > { %v219_v45 = vld [vmem:[%s2135_s1 + $0x10] sm:$0xff]  ;;  %v222_v46 = vld [vmem:[%s2135_s1 + $0x28] sm:$0xff]  ;;  %v273_v50 = vld [vmem:[%s2135_s1 + $0x1c0] sm:$0xff] }
  0x34   : > { %1243 = vmatpush1.bf16.msra.mxu0 %v1242_v41  ;;  %v1762_v41 = vshrl.u32 %v315_v40, 7  ;;  %v1286_v47 = vpack.c.bf16 %v222_v46, %v219_v45  ;;  %v276_v51 = vld [vmem:[%s2135_s1 + $0x1d8] sm:$0xff]  ;;  %v1787_v52 = vld [vmem:[%s2136_s2] sm:$0x7]  ;;  %v279_v59 = vld [vmem:[%s2135_s1 + $0x1f0] sm:$0xff] }
  0x35   : > { %1245 = vmatprep.subr.bf16.mxu0 %v1244_v42  ;;  %v267_v42 = vld [vmem:[%s2135_s1 + $0x190] sm:$0xff]  ;;  %v1288_v53 = vpack.c.bf16 %v276_v51, %v273_v50  ;;  %v234_v63 = vld [vmem:[%s2135_s1 + $0x88] sm:$0xff]  ;;  %v285_v5 = vld [vmem:[%s2135_s1 + $0x220] sm:$0xff] }
  0x36   : > { %v1284_v44 = vpack.c.bf16 %v270_v43, %v267_v42  ;;  %v231_v62 = vld [vmem:[%s2135_s1 + $0x70] sm:$0xff]  ;;  %v288_v6 = vld [vmem:[%s2135_s1 + $0x238] sm:$0xff]  ;;  %v246_v18 = vld [vmem:[%s2135_s1 + $0xe8] sm:$0xff] }
  0x37   : > { %v1294_v1 = vpack.c.bf16 %v234_v63, %v231_v62  ;;  %v1296_v7 = vpack.c.bf16 %v288_v6, %v285_v5  ;;  %v291_v13 = vld [vmem:[%s2135_s1 + $0x250] sm:$0xff]  ;;  %v300_v22 = vld [vmem:[%s2135_s1 + $0x298] sm:$0xff]  ;;  %v249_v24 = vld [vmem:[%s2135_s1 + $0x100] sm:$0xff] }
  0x38   : > { %1247 = vmatpush1.bf16.msra.mxu0 %v1246_v48  ;;  %1285 = vmatprep.subr.bf16.mxu1 %v1284_v44  ;;  %v317_v48 = vsub.s32 0, %v1762_v41  ;;  %v243_v17 = vld [vmem:[%s2135_s1 + $0xd0] sm:$0xff]  ;;  %v252_v25 = vld [vmem:[%s2135_s1 + $0x118] sm:$0xff]  ;;  %v306_v29 = vld [vmem:[%s2135_s1 + $0x2c8] sm:$0xff] }
  0x39   : > { %1249 = vmatprep.subr.bf16.mxu0 %v1248_v49  ;;  %v321_v49 = vsub.s32 1, %v1762_v41  ;;  %1287 = vmatpush3.bf16.msra.mxu1 %v1286_v47  ;;  %v303_v28 = vld [vmem:[%s2135_s1 + $0x2b0] sm:$0xff]  ;;  %v309_v35 = vld [vmem:[%s2135_s1 + $0x2e0] sm:$0xff]  ;;  %v264_v43 = vld [vmem:[%s2135_s1 + $0x178] sm:$0xff] }
  0x3a   : > { %1289 = vmatprep.subr.bf16.mxu1 %v1288_v53  ;;  %v318_v57 = vrot.slane %v1787_v52, %v317_v48  ;;  %v1308_v30 = vpack.c.bf16 %v306_v29, %v303_v28  ;;  %v255_v31 = vld [vmem:[%s2135_s1 + $0x130] sm:$0xff]  ;;  %v261_v42 = vld [vmem:[%s2135_s1 + $0x160] sm:$0xff] }
  0x3b   : > { %v322_v58 = vrot.slane %v1787_v52, %v321_v49  ;;  %v1314_v44 = vpack.c.bf16 %v264_v43, %v261_v42 }
  0x3c   : > { %1251 = vmatpush1.bf16.msra.mxu0 %v1250_v54  ;;  %v225_v54 = vld [vmem:[%s2135_s1 + $0x40] sm:$0xff] }
  0x3d   : > { %1253 = vmatprep.subr.bf16.mxu0 %v1252_v55  ;;  %v228_v55 = vld [vmem:[%s2135_s1 + $0x58] sm:$0xff] }
  0x3e   : > { %v1290_v56 = vpack.c.bf16 %v228_v55, %v225_v54 }
  0x40   : > { %1255 = vmatpush1.bf16.msra.mxu0 %v1254_v60  ;;  %1291 = vmatpush3.bf16.msra.mxu1 %v1290_v56  ;;  %v282_v60 = vld [vmem:[%s2135_s1 + $0x208] sm:$0xff] }
  0x41   : > { %1257 = vmatprep.subr.bf16.mxu0 %v1256_v61  ;;  %v1292_v61 = vpack.c.bf16 %v282_v60, %v279_v59 }
  0x43   : > { %1293 = vmatprep.subr.bf16.mxu1 %v1292_v61 }
  0x44   : > { %1259 = vmatpush1.bf16.msra.mxu0 %v1258_v2  ;;  %1295 = vmatpush3.bf16.msra.mxu1 %v1294_v1 }
  0x45   : > { %1261 = vmatprep.subr.bf16.mxu0 %v1260_v3  ;;  %1297 = vmatprep.subr.bf16.mxu1 %v1296_v7 }
  0x48   : > { %1263 = vmatpush1.bf16.msra.mxu0 %v1262_v8  ;;  %v237_v8 = vld [vmem:[%s2135_s1 + $0xa0] sm:$0xff] }
  0x49   : > { %1265 = vmatprep.subr.bf16.mxu0 %v1264_v9  ;;  %v240_v9 = vld [vmem:[%s2135_s1 + $0xb8] sm:$0xff] }
  0x4a   : > { %v1298_v11 = vpack.c.bf16 %v240_v9, %v237_v8 }
  0x4c   : > { %1267 = vmatpush1.bf16.msra.mxu0 %v1266_v14  ;;  %v294_v14 = vld [vmem:[%s2135_s1 + $0x268] sm:$0xff]  ;;  %1299 = vmatpush3.bf16.msra.mxu1 %v1298_v11 }
  0x4d   : > { %1269 = vmatprep.subr.bf16.mxu0 %v1268_v15  ;;  %v1300_v16 = vpack.c.bf16 %v294_v14, %v291_v13 }
  0x4f   : > { %1301 = vmatprep.subr.bf16.mxu1 %v1300_v16 }
  0x50   : > { %1271 = vmatpush1.bf16.msra.mxu0 %v1270_v20  ;;  %v1302_v20 = vpack.c.bf16 %v246_v18, %v243_v17 }
  0x51   : > { %1273 = vmatprep.subr.bf16.mxu0 %v1272_v21  ;;  %v297_v21 = vld [vmem:[%s2135_s1 + $0x280] sm:$0xff] }
  0x52   : > { %1303 = vmatpush3.bf16.msra.mxu1 %v1302_v20  ;;  %v1304_v23 = vpack.c.bf16 %v300_v22, %v297_v21 }
  0x54   : > { %1275 = vmatpush1.bf16.msra.mxu0 %v1274_v26  ;;  %1305 = vmatprep.subr.bf16.mxu1 %v1304_v23 }
  0x55   : > { %1277 = vmatprep.subr.bf16.mxu0 %v1276_v27  ;;  %v1306_v27 = vpack.c.bf16 %v252_v25, %v249_v24 }
  0x57   : > { %1307 = vmatpush3.bf16.msra.mxu1 %v1306_v27 }
  0x58   : > { %1279 = vmatpush1.bf16.msra.mxu0 %v1278_v32  ;;  %v258_v32 = vld [vmem:[%s2135_s1 + $0x148] sm:$0xff]  ;;  %1309 = vmatprep.subr.bf16.mxu1 %v1308_v30 }
  0x59   : > { %1281 = vmatprep.subr.bf16.mxu0 %v1280_v33  ;;  %v1310_v34 = vpack.c.bf16 %v258_v32, %v255_v31 }
  0x5b   : > { %1311 = vmatpush3.bf16.msra.mxu1 %v1310_v34 }
  0x5c   : > { %1283 = vmatpush1.bf16.msra.mxu0 %v1282_v36  ;;  %v312_v36 = vld [vmem:[%s2135_s1 + $0x2f8] sm:$0xff] }
  0x5d   : > { %v1312_v40 = vpack.c.bf16 %v312_v36, %v309_v35 }
  0x5f   : > { %395 = vmatmul.mubr.f32.vlgmr.msra.gmra.mrb[0].mxu0 %v1751_v37  ;;  %1313 = vmatprep.subr.bf16.mxu1 %v1312_v40 }
  0x60   : > { %400 = vmatprep.mubr.f32.mxu0 %v1754_v38  ;;  %1315 = vmatpush3.bf16.msra.mxu1 %v1314_v44 }
  0x63   : > { %401 = vmatmul.mubr.f32.gmra.mrb[2].mxu0 %v1759_v39  ;;  %472 = vmatmul.mubr.f32.vlgmr.msra.gmra.mrb[0].mxu1 %v1751_v37 }
  0x64   : > { %476 = vmatprep.mubr.f32.mxu1 %v1754_v38 }
  0x67   : > { %477 = vmatmul.mubr.f32.gmra.mrb[2].mxu1 %v1759_v39 }
 0x132   : > { %v396_v0 = vpop.f32.mrb[0].mxu0 }
 0x133   : > { %v398_v2 = vpop.f32.mrb[1].mxu0  ;;  %v1809_v3 = vadd.f32 %v396_v0, %v318_v57 }
 0x134   : > { %v399_v4 = vadd.f32 %v398_v2, %v322_v58 }
 0x136   : > { %507 = vrot.lane.b32.xlu0 %v399_v4, %s1479_s8  ;;  %493 = vrot.lane.b32.xlu1 %v399_v4, %s1480_s9  ;;  %v402_v10 = vpop.f32.mrb[2].mxu0  ;;  %v1832_v15 = vmul.f32 %v399_v4, %v1809_v3  ;;  %v1214_v0 = vpop.f32.mrb[0].mxu1 }
 0x137   : > { %v404_v12 = vpop.f32.mrb[3].mxu0  ;;  %v1855_v26 = vadd.f32 %v402_v10, %v318_v57  ;;  %v1215_v2 = vpop.f32.mrb[1].mxu1 }
 0x138   : > { %v405_v19 = vadd.f32 %v404_v12, %v322_v58  ;;  %v485_v45 = vsel %vm484_vm0, %v1832_v15, 0.0 }
 0x13a   : > { %521 = vrot.lane.b32.xlu1 %v399_v4, %s1481_s25  ;;  %639 = vrot.lane.b32.xlu0 %v1832_v15, %s1480_s9  ;;  %v483_v33 = vmul.f32 %v405_v19, %v1855_v26  ;;  %v1930_v4 = vadd.f32 %v1215_v2, %v1214_v0  ;;  %v1217_v30 = vpop.f32.mrb[2].mxu1 }
 0x13b   : > { %v1218_v31 = vpop.f32.mrb[3].mxu1 }
 0x13c   : > { %v488_v46 = vsel %vm484_vm0, %v483_v33, 0.0  ;;  %v1946_v32 = vadd.f32 %v1218_v31, %v1217_v30 }
 0x13e   : > { %495 = vrot.lane.b32.xlu1 %v405_v19, %s1480_s9  ;;  %791 = vrot.lane.b32.xlu0 %v1832_v15, %s1479_s8 }
 0x142   : > { %523 = vrot.lane.b32.xlu1 %v405_v19, %s1481_s25 }
 0x146   : > { %641 = vrot.lane.b32.xlu1 %v483_v33, %s1480_s9 }
 0x14a   : > { %793 = vrot.lane.b32.xlu1 %v483_v33, %s1479_s8 }
 0x14e   : > { %941 = vrot.lane.b32.xlu1 %v483_v33, %s1481_s25 }
 0x15d   : > { %486 = vadd.xlane.f32.xlu0 %v485_v45 }
 0x173   : > { %509 = vrot.lane.b32.xlu0 %v405_v19, %s1479_s8 }
 0x192   : > { %489 = vadd.xlane.f32.xlu0 %v488_v46 }
 0x1a8   : > { %v494_v47 = vpop.permute.xlu1 %493  ;;  %v508_v50 = vpop.permute.xlu0 %507 }
 0x1a9   : > { %v499_v49 = vmul.f32 %v494_v47, %v1809_v3  ;;  %v513_v51 = vmul.f32 %v508_v50, %v1809_v3 }
 0x1ab   : > { %v501_v55 = vsel %vm484_vm0, %v499_v49, 0.0  ;;  %v515_v57 = vsel %vm484_vm0, %v513_v51, 0.0 }
 0x1ac   : > { %v522_v48 = vpop.permute.xlu1 %521  ;;  %v640_v53 = vpop.permute.xlu0 %639 }
 0x1ad   : > { %v527_v37 = vmul.f32 %v522_v48, %v1809_v3  ;;  %v645_v62 = vsel %vm484_vm0, %v640_v53, 0.0 }
 0x1af   : > { %625 = vrot.lane.b32.xlu0 %v527_v37, %s1480_s9  ;;  %v529_v60 = vsel %vm484_vm0, %v527_v37, 0.0 }
 0x1b0   : > { %v496_v38 = vpop.permute.xlu1 %495  ;;  %v792_v54 = vpop.permute.xlu0 %791 }
 0x1b1   : > { %v500_v39 = vmul.f32 %v496_v38, %v1855_v26  ;;  %v797_v12 = vsel %vm484_vm0, %v792_v54, 0.0 }
 0x1b3   : > { %655 = vrot.lane.b32.xlu1 %v500_v39, %s1480_s9  ;;  %653 = vrot.lane.b32.xlu0 %v499_v49, %s1480_s9  ;;  %v504_v8 = vsel %vm484_vm0, %v500_v39, 0.0 }
 0x1b4   : > { %v524_v61 = vpop.permute.xlu1 %523 }
 0x1b5   : > { %v528_v63 = vmul.f32 %v524_v61, %v1855_v26 }
 0x1b7   : > { %667 = vrot.lane.b32.xlu0 %v513_v51, %s1480_s9  ;;  %v532_v14 = vsel %vm484_vm0, %v528_v63, 0.0 }
 0x1b8   : > { %v642_v9 = vpop.permute.xlu1 %641 }
 0x1b9   : > { %v648_v18 = vsel %vm484_vm0, %v642_v9, 0.0 }
 0x1bb   : > { %767 = vrot.lane.b32.xlu0 %v513_v51, %s1479_s8 }
 0x1bf   : > { %779 = vrot.lane.b32.xlu0 %v527_v37, %s1479_s8 }
 0x1c3   : > { %903 = vrot.lane.b32.xlu0 %v499_v49, %s1481_s25 }
 0x1c7   : > { %915 = vrot.lane.b32.xlu0 %v513_v51, %s1481_s25 }
 0x1cb   : > { %927 = vrot.lane.b32.xlu0 %v527_v37, %s1481_s25 }
 0x1ea   : > { %502 = vadd.xlane.f32.xlu0 %v501_v55  ;;  %v1910_v56 = vpop.xlane.xlu0 %486 }
 0x1ee   : > { %516 = vadd.xlane.f32.xlu0 %v515_v57  ;;  %v510_v58 = vpop.permute.xlu0 %509 }
 0x1ef   : > { %v514_v59 = vmul.f32 %v510_v58, %v1855_v26 }
 0x1f1   : > { %669 = vrot.lane.b32.xlu1 %v514_v59, %s1480_s9  ;;  %v518_v11 = vsel %vm484_vm0, %v514_v59, 0.0 }
 0x1f2   : > { %530 = vadd.xlane.f32.xlu0 %v529_v60 }
 0x1f5   : > { %769 = vrot.lane.b32.xlu1 %v514_v59, %s1479_s8 }
 0x1f6   : > { %646 = vadd.xlane.f32.xlu0 %v645_v62 }
 0x1f9   : > { %781 = vrot.lane.b32.xlu1 %v528_v63, %s1479_s8 }
 0x1fd   : > { %905 = vrot.lane.b32.xlu1 %v500_v39, %s1481_s25 }
 0x201   : > { %917 = vrot.lane.b32.xlu1 %v514_v59, %s1481_s25 }
 0x205   : > { %929 = vrot.lane.b32.xlu1 %v528_v63, %s1481_s25 }
 0x209   : > { %805 = vrot.lane.b32.xlu1 %v500_v39, %s1479_s8 }
 0x20c   : > { %627 = vrot.lane.b32.xlu0 %v528_v63, %s1480_s9 }
 0x210   : > { %803 = vrot.lane.b32.xlu0 %v499_v49, %s1479_s8 }
 0x214   : > { %939 = vrot.lane.b32.xlu0 %v1832_v15, %s1481_s25  ;;  %v794_v15 = vpop.permute.xlu1 %793 }
 0x215   : > { %v800_v16 = vsel %vm484_vm0, %v794_v15, 0.0  ;;  %v325_v15 = vsub.s32 2, %v1762_v41 }
 0x218   : > { %v1948_v33 = vpop.permute.xlu1 %941 }
 0x21f   : > { %v1928_v1 = vpop.xlane.xlu0 %489 }
 0x223   : > { %v626_v5 = vpop.permute.xlu0 %625 }
 0x224   : > { %v631_v19 = vsel %vm484_vm0, %v626_v5, 0.0 }
 0x225   : > { %v656_v34 = vpop.permute.xlu1 %655 }
 0x227   : > { %v654_v6 = vpop.permute.xlu0 %653 }
 0x228   : > { %v659_v22 = vsel %vm484_vm0, %v654_v6, 0.0 }
 0x22b   : > { %v668_v7 = vpop.permute.xlu0 %667 }
 0x22c   : > { %v673_v25 = vsel %vm484_vm0, %v668_v7, 0.0 }
 0x22d   : > { %505 = vadd.xlane.f32.xlu1 %v504_v8 }
 0x22f   : > { %v768_v10 = vpop.permute.xlu0 %767 }
 0x230   : > { %v773_v28 = vsel %vm484_vm0, %v768_v10, 0.0 }
 0x231   : > { %519 = vadd.xlane.f32.xlu1 %v518_v11 }
 0x233   : > { %798 = vadd.xlane.f32.xlu0 %v797_v12  ;;  %v780_v13 = vpop.permute.xlu0 %779 }
 0x234   : > { %v785_v29 = vsel %vm484_vm0, %v780_v13, 0.0 }
 0x235   : > { %533 = vadd.xlane.f32.xlu1 %v532_v14 }
 0x237   : > { %801 = vadd.xlane.f32.xlu0 %v800_v16  ;;  %v904_v17 = vpop.permute.xlu0 %903 }
 0x238   : > { %v909_v21 = vsel %vm484_vm0, %v904_v17, 0.0  ;;  %v1964_v17 = vrot.slane %v1787_v52, %v325_v15 }
 0x239   : > { %649 = vadd.xlane.f32.xlu1 %v648_v18 }
 0x23b   : > { %632 = vadd.xlane.f32.xlu0 %v631_v19  ;;  %v916_v20 = vpop.permute.xlu0 %915  ;;  %v1969_v19 = vadd.f32 %v1930_v4, %v1964_v17  ;;  %v948_v4 = vsel %vm484_vm0, %v1948_v33, 0.0 }
 0x23c   : > { %v921_v23 = vsel %vm484_vm0, %v916_v20, 0.0 }
 0x23d   : > { %910 = vadd.xlane.f32.xlu1 %v909_v21 }
 0x23f   : > { %660 = vadd.xlane.f32.xlu0 %v659_v22  ;;  %v928_v24 = vpop.permute.xlu0 %927 }
 0x240   : > { %v933_v27 = vsel %vm484_vm0, %v928_v24, 0.0 }
 0x241   : > { %922 = vadd.xlane.f32.xlu1 %v921_v23 }
 0x243   : > { %674 = vadd.xlane.f32.xlu0 %v673_v25 }
 0x245   : > { %934 = vadd.xlane.f32.xlu1 %v933_v27 }
 0x247   : > { %774 = vadd.xlane.f32.xlu0 %v773_v28 }
 0x24b   : > { %786 = vadd.xlane.f32.xlu0 %v785_v29 }
 0x263   : > { %v670_v35 = vpop.permute.xlu1 %669 }
 0x264   : > { %v676_v0 = vsel %vm484_vm0, %v670_v35, 0.0 }
 0x267   : > { %v770_v40 = vpop.permute.xlu1 %769 }
 0x268   : > { %v776_v10 = vsel %vm484_vm0, %v770_v40, 0.0 }
 0x26b   : > { %v782_v47 = vpop.permute.xlu1 %781 }
 0x26c   : > { %v788_v13 = vsel %vm484_vm0, %v782_v47, 0.0 }
 0x26f   : > { %v906_v54 = vpop.permute.xlu1 %905 }
 0x270   : > { %v912_v18 = vsel %vm484_vm0, %v906_v54, 0.0 }
 0x273   : > { %v918_v61 = vpop.permute.xlu1 %917 }
 0x274   : > { %v924_v23 = vsel %vm484_vm0, %v918_v61, 0.0 }
 0x277   : > { %v503_v36 = vpop.xlane.xlu0 %502  ;;  %v930_v8 = vpop.permute.xlu1 %929 }
 0x278   : > { %v535_v43 = vmax.f32 %v1910_v56, %v503_v36  ;;  %v936_v52 = vsel %vm484_vm0, %v930_v8, 0.0 }
 0x27b   : > { %v517_v42 = vpop.xlane.xlu0 %516  ;;  %v806_v14 = vpop.permute.xlu1 %805 }
 0x27c   : > { %v537_v44 = vmax.f32 %v535_v43, %v517_v42  ;;  %v812_v16 = vsel %vm484_vm0, %v806_v14, 0.0 }
 0x27f   : > { %v531_v45 = vpop.xlane.xlu0 %530 }
 0x280   : > { %v539_v46 = vmax.f32 %v537_v44, %v531_v45 }
 0x282   : > { %v541_v48 = vsub.f32 %v1910_v56, %v539_v46  ;;  %v547_v37 = vsub.f32 %v503_v36, %v539_v46  ;;  %v553_v38 = vsub.f32 %v517_v42, %v539_v46  ;;  %v559_v49 = vsub.f32 %v531_v45, %v539_v46 }
 0x283   : > { %v1952_v39 = vpop.xlane.xlu0 %646  ;;  %v662_v56 = vsel %vm484_vm0, %v656_v34, 0.0 }
 0x284   : > { %v543_v50 = vmul.f32 1.442695, %v541_v48  ;;  %v549_v51 = vmul.f32 1.442695, %v547_v37  ;;  %v555_v53 = vmul.f32 1.442695, %v553_v38 }
 0x285   : > { %v561_v55 = vmul.f32 1.442695, %v559_v49 }
 0x286   : > { %1359 = vpow2.f32 %v543_v50 }
 0x287   : > { %1361 = vpow2.f32 %v549_v51  ;;  %v628_v57 = vpop.permute.xlu0 %627 }
 0x288   : > { %v634_v58 = vsel %vm484_vm0, %v628_v57, 0.0  ;;  %1363 = vpow2.f32 %v555_v53 }
 0x289   : > { %635 = vadd.xlane.f32.xlu1 %v634_v58  ;;  %1365 = vpow2.f32 %v561_v55 }
 0x28b   : > { %v804_v59 = vpop.permute.xlu0 %803 }
 0x28c   : > { %v809_v60 = vsel %vm484_vm0, %v804_v59, 0.0 }
 0x28d   : > { %663 = vadd.xlane.f32.xlu1 %v662_v56  ;;  %810 = vadd.xlane.f32.xlu0 %v809_v60 }
 0x28f   : > { %v940_v62 = vpop.permute.xlu0 %939 }
 0x290   : > { %v1360_v63 = vpop.eup %1359  ;;  %v945_v2 = vsel %vm484_vm0, %v940_v62, 0.0 }
 0x291   : > { %v1362_v5 = vpop.eup %1361  ;;  %677 = vadd.xlane.f32.xlu1 %v676_v0  ;;  %946 = vadd.xlane.f32.xlu0 %v945_v2 }
 0x292   : > { %v565_v6 = vadd.f32 %v1362_v5, %v1360_v63  ;;  %v1364_v7 = vpop.eup %1363 }
 0x293   : > { %v1366_v11 = vpop.eup %1365 }
 0x294   : > { %v567_v9 = vadd.f32 %v1364_v7, %v565_v6 }
 0x295   : > { %777 = vadd.xlane.f32.xlu1 %v776_v10 }
 0x296   : > { %v569_v12 = vadd.f32 %v1366_v11, %v567_v9 }
 0x298   : > { %1367 = vrcp.f32 %v569_v12 }
 0x299   : > { %789 = vadd.xlane.f32.xlu1 %v788_v13 }
 0x29d   : > { %813 = vadd.xlane.f32.xlu1 %v812_v16 }
 0x2a1   : > { %913 = vadd.xlane.f32.xlu1 %v912_v18 }
 0x2a2   : > { %v1368_v20 = vpop.eup %1367 }
 0x2a3   : > { %v581_v21 = vmul.f32 %v1368_v20, %v1362_v5  ;;  %v1971_v22 = vmul.f32 %v1368_v20, %v1360_v63  ;;  %v595_v24 = vmul.f32 %v1368_v20, %v1364_v7  ;;  %v609_v27 = vmul.f32 %v1368_v20, %v1366_v11 }
 0x2a4   : > { %v1993_v11 = vadd.f32 %v1946_v32, %v1964_v17 }
 0x2a5   : > { %925 = vadd.xlane.f32.xlu1 %v924_v23  ;;  %v583_v41 = vmul.f32 %v581_v21, %v1969_v19  ;;  %v597_v25 = vmul.f32 %v595_v24, %v1969_v19  ;;  %v611_v29 = vmul.f32 %v609_v27, %v1969_v19 }
 0x2a7   : > { %587 = vrot.lane.b32.xlu0 %v583_v41, %s1480_s9 }
 0x2a9   : > { %937 = vadd.xlane.f32.xlu1 %v936_v52 }
 0x2ab   : > { %601 = vrot.lane.b32.xlu0 %v597_v25, %s1479_s8 }
 0x2ad   : > { %949 = vadd.xlane.f32.xlu1 %v948_v4 }
 0x2ba   : > { %v506_v28 = vpop.xlane.xlu1 %505 }
 0x2bb   : > { %v536_v31 = vmax.f32 %v1928_v1, %v506_v28 }
 0x2be   : > { %v520_v30 = vpop.xlane.xlu1 %519  ;;  %615 = vrot.lane.b32.xlu1 %v611_v29, %s1481_s25 }
 0x2bf   : > { %v538_v35 = vmax.f32 %v536_v31, %v520_v30 }
 0x2c0   : > { %v1984_v34 = vpop.xlane.xlu0 %798 }
 0x2c2   : > { %v534_v36 = vpop.xlane.xlu1 %533 }
 0x2c3   : > { %v540_v40 = vmax.f32 %v538_v35, %v534_v36 }
 0x2c4   : > { %v1986_v42 = vpop.xlane.xlu0 %801 }
 0x2c5   : > { %v542_v43 = vsub.f32 %v1928_v1, %v540_v40  ;;  %v548_v33 = vsub.f32 %v506_v28, %v540_v40  ;;  %v554_v44 = vsub.f32 %v520_v30, %v540_v40  ;;  %v560_v45 = vsub.f32 %v534_v36, %v540_v40 }
 0x2c6   : > { %v650_v30 = vpop.xlane.xlu1 %649 }
 0x2c7   : > { %v545_v46 = vmul.f32 1.442695, %v542_v43  ;;  %v551_v47 = vmul.f32 1.442695, %v548_v33  ;;  %v557_v48 = vmul.f32 1.442695, %v554_v44 }
 0x2c8   : > { %v633_v37 = vpop.xlane.xlu0 %632  ;;  %v563_v38 = vmul.f32 1.442695, %v560_v45 }
 0x2c9   : > { %1369 = vpow2.f32 %v545_v46  ;;  %v679_v50 = vmax.f32 %v633_v37, %v1952_v39 }
 0x2ca   : > { %1371 = vpow2.f32 %v551_v47  ;;  %v911_v31 = vpop.xlane.xlu1 %910 }
 0x2cb   : > { %1373 = vpow2.f32 %v557_v48 }
 0x2cc   : > { %v661_v49 = vpop.xlane.xlu0 %660  ;;  %1375 = vpow2.f32 %v563_v38 }
 0x2cd   : > { %v681_v51 = vmax.f32 %v679_v50, %v661_v49 }
 0x2ce   : > { %v923_v35 = vpop.xlane.xlu1 %922 }
 0x2cf   : > { %v951_v38 = vmax.f32 %v911_v31, %v923_v35 }
 0x2d0   : > { %v675_v53 = vpop.xlane.xlu0 %674 }
 0x2d1   : > { %v683_v54 = vmax.f32 %v681_v51, %v675_v53 }
 0x2d2   : > { %v935_v40 = vpop.xlane.xlu1 %934 }
 0x2d3   : > { %v1370_v55 = vpop.eup %1369  ;;  %v685_v1 = vsub.f32 %v633_v37, %v683_v54  ;;  %v691_v57 = vsub.f32 %v1952_v39, %v683_v54  ;;  %v697_v58 = vsub.f32 %v661_v49, %v683_v54  ;;  %v703_v56 = vsub.f32 %v675_v53, %v683_v54 }
 0x2d4   : > { %v1372_v59 = vpop.eup %1371  ;;  %v775_v36 = vpop.xlane.xlu0 %774 }
 0x2d5   : > { %v566_v60 = vadd.f32 %v1372_v59, %v1370_v55  ;;  %v687_v61 = vmul.f32 1.442695, %v685_v1  ;;  %v693_v62 = vmul.f32 1.442695, %v691_v57  ;;  %v1374_v63 = vpop.eup %1373  ;;  %v699_v0 = vmul.f32 1.442695, %v697_v58 }
 0x2d6   : > { %v1376_v5 = vpop.eup %1375  ;;  %v705_v6 = vmul.f32 1.442695, %v703_v56 }
 0x2d7   : > { %v568_v2 = vadd.f32 %v1374_v63, %v566_v60  ;;  %1377 = vpow2.f32 %v687_v61 }
 0x2d8   : > { %1379 = vpow2.f32 %v693_v62  ;;  %v787_v43 = vpop.xlane.xlu0 %786 }
 0x2d9   : > { %v570_v7 = vadd.f32 %v1376_v5, %v568_v2  ;;  %1381 = vpow2.f32 %v699_v0  ;;  %v815_v33 = vmax.f32 %v775_v36, %v787_v43 }
 0x2db   : > { %1383 = vrcp.f32 %v570_v7  ;;  %v817_v45 = vmax.f32 %v815_v33, %v1984_v34 }
 0x2dc   : > { %1385 = vpow2.f32 %v705_v6 }
 0x2e1   : > { %v1378_v8 = vpop.eup %1377 }
 0x2e2   : > { %v1380_v9 = vpop.eup %1379 }
 0x2e3   : > { %v709_v39 = vadd.f32 %v1380_v9, %v1378_v8  ;;  %v1382_v10 = vpop.eup %1381 }
 0x2e5   : > { %v1384_v12 = vpop.eup %1383  ;;  %v711_v13 = vadd.f32 %v1382_v10, %v709_v39 }
 0x2e6   : > { %v1386_v14 = vpop.eup %1385  ;;  %v582_v15 = vmul.f32 %v1384_v12, %v1372_v59  ;;  %v1995_v16 = vmul.f32 %v1384_v12, %v1370_v55  ;;  %v596_v21 = vmul.f32 %v1384_v12, %v1374_v63  ;;  %v610_v41 = vmul.f32 %v1384_v12, %v1376_v5 }
 0x2e7   : > { %v713_v18 = vadd.f32 %v1386_v14, %v711_v13  ;;  %v953_v55 = vmax.f32 %v951_v38, %v935_v40 }
 0x2e8   : > { %v584_v20 = vmul.f32 %v582_v15, %v1993_v11  ;;  %v598_v23 = vmul.f32 %v596_v21, %v1993_v11  ;;  %v612_v32 = vmul.f32 %v610_v41, %v1993_v11 }
 0x2e9   : > { %1387 = vrcp.f32 %v713_v18 }
 0x2ea   : > { %589 = vrot.lane.b32.xlu0 %v584_v20, %s1480_s9 }
 0x2ee   : > { %603 = vrot.lane.b32.xlu0 %v598_v23, %s1479_s8 }
 0x2f2   : > { %617 = vrot.lane.b32.xlu0 %v612_v32, %s1481_s25 }
 0x2f3   : > { %v1388_v17 = vpop.eup %1387 }
 0x2f4   : > { %v719_v24 = vmul.f32 %v1388_v17, %v1378_v8  ;;  %v2003_v52 = vmul.f32 %v1388_v17, %v1380_v9  ;;  %v739_v4 = vmul.f32 %v1388_v17, %v1382_v10  ;;  %v753_v28 = vmul.f32 %v1388_v17, %v1386_v14 }
 0x2f6   : > { %v721_v25 = vmul.f32 %v719_v24, %v1969_v19  ;;  %v741_v27 = vmul.f32 %v739_v4, %v1969_v19  ;;  %v755_v29 = vmul.f32 %v753_v28, %v1969_v19 }
 0x2f8   : > { %725 = vrot.lane.b32.xlu0 %v721_v25, %s1481_s25 }
 0x2fc   : > { %745 = vrot.lane.b32.xlu0 %v741_v27, %s1480_s9 }
 0x300   : > { %759 = vrot.lane.b32.xlu0 %v755_v29, %s1479_s8 }
 0x316   : > { %v636_v44 = vpop.xlane.xlu1 %635 }
 0x317   : > { %v680_v46 = vmax.f32 %v636_v44, %v650_v30 }
 0x31a   : > { %v664_v47 = vpop.xlane.xlu1 %663  ;;  %v811_v48 = vpop.xlane.xlu0 %810 }
 0x31b   : > { %v819_v37 = vmax.f32 %v817_v45, %v811_v48  ;;  %v682_v49 = vmax.f32 %v680_v46, %v664_v47 }
 0x31d   : > { %v821_v50 = vsub.f32 %v775_v36, %v819_v37  ;;  %v827_v51 = vsub.f32 %v787_v43, %v819_v37  ;;  %v833_v53 = vsub.f32 %v1984_v34, %v819_v37  ;;  %v839_v54 = vsub.f32 %v811_v48, %v819_v37 }
 0x31e   : > { %v678_v1 = vpop.xlane.xlu1 %677  ;;  %v947_v57 = vpop.xlane.xlu0 %946 }
 0x31f   : > { %v823_v58 = vmul.f32 1.442695, %v821_v50  ;;  %v829_v59 = vmul.f32 1.442695, %v827_v51  ;;  %v835_v56 = vmul.f32 1.442695, %v833_v53  ;;  %v684_v60 = vmax.f32 %v682_v49, %v678_v1 }
 0x320   : > { %v841_v61 = vmul.f32 1.442695, %v839_v54  ;;  %v955_v62 = vmax.f32 %v953_v55, %v947_v57 }
 0x321   : > { %1389 = vpow2.f32 %v823_v58  ;;  %v686_v63 = vsub.f32 %v636_v44, %v684_v60  ;;  %v692_v0 = vsub.f32 %v650_v30, %v684_v60  ;;  %v698_v2 = vsub.f32 %v664_v47, %v684_v60 }
 0x322   : > { %1391 = vpow2.f32 %v829_v59  ;;  %v704_v5 = vsub.f32 %v678_v1, %v684_v60  ;;  %v957_v6 = vsub.f32 %v911_v31, %v955_v62  ;;  %v963_v7 = vsub.f32 %v923_v35, %v955_v62  ;;  %v778_v8 = vpop.xlane.xlu1 %777 }
 0x323   : > { %1393 = vpow2.f32 %v835_v56  ;;  %v689_v34 = vmul.f32 1.442695, %v686_v63  ;;  %v695_v9 = vmul.f32 1.442695, %v692_v0  ;;  %v701_v39 = vmul.f32 1.442695, %v698_v2 }
 0x324   : > { %1395 = vpow2.f32 %v841_v61  ;;  %v707_v10 = vmul.f32 1.442695, %v704_v5  ;;  %v959_v12 = vmul.f32 1.442695, %v957_v6  ;;  %v969_v13 = vsub.f32 %v935_v40, %v955_v62 }
 0x325   : > { %1397 = vpow2.f32 %v689_v34  ;;  %v965_v14 = vmul.f32 1.442695, %v963_v7  ;;  %v975_v15 = vsub.f32 %v947_v57, %v955_v62 }
 0x326   : > { %1399 = vpow2.f32 %v695_v9  ;;  %v790_v18 = vpop.xlane.xlu1 %789  ;;  %v971_v21 = vmul.f32 1.442695, %v969_v13 }
 0x327   : > { %1401 = vpow2.f32 %v701_v39  ;;  %v816_v20 = vmax.f32 %v778_v8, %v790_v18  ;;  %v977_v41 = vmul.f32 1.442695, %v975_v15 }
 0x328   : > { %1403 = vpow2.f32 %v707_v10 }
 0x329   : > { %1405 = vpow2.f32 %v959_v12  ;;  %v818_v23 = vmax.f32 %v816_v20, %v1986_v42 }
 0x32a   : > { %1407 = vpow2.f32 %v965_v14  ;;  %v814_v32 = vpop.xlane.xlu1 %813 }
 0x32b   : > { %v1390_v17 = vpop.eup %1389  ;;  %v820_v24 = vmax.f32 %v818_v23, %v814_v32  ;;  %1409 = vpow2.f32 %v971_v21 }
 0x32c   : > { %v1392_v25 = vpop.eup %1391  ;;  %1411 = vpow2.f32 %v977_v41 }
 0x32d   : > { %v2014_v4 = vpop.eup %1393  ;;  %v845_v27 = vadd.f32 %v1392_v25, %v1390_v17  ;;  %v822_v28 = vsub.f32 %v778_v8, %v820_v24  ;;  %v828_v29 = vsub.f32 %v790_v18, %v820_v24  ;;  %v834_v30 = vsub.f32 %v1986_v42, %v820_v24 }
 0x32e   : > { %v1396_v31 = vpop.eup %1395  ;;  %v840_v35 = vsub.f32 %v814_v32, %v820_v24  ;;  %v914_v36 = vpop.xlane.xlu1 %913 }
 0x32f   : > { %v2017_v40 = vpop.eup %1397  ;;  %v847_v43 = vadd.f32 %v2014_v4, %v845_v27  ;;  %v825_v33 = vmul.f32 1.442695, %v822_v28  ;;  %v831_v44 = vmul.f32 1.442695, %v828_v29  ;;  %v837_v46 = vmul.f32 1.442695, %v834_v30 }
 0x330   : > { %v1400_v45 = vpop.eup %1399  ;;  %v843_v42 = vmul.f32 1.442695, %v840_v35 }
 0x331   : > { %v2020_v47 = vpop.eup %1401  ;;  %v849_v48 = vadd.f32 %v1396_v31, %v847_v43  ;;  %v710_v37 = vadd.f32 %v1400_v45, %v2017_v40  ;;  %1413 = vpow2.f32 %v825_v33 }
 0x332   : > { %v2023_v38 = vpop.eup %1403  ;;  %1415 = vpow2.f32 %v831_v44  ;;  %v926_v49 = vpop.xlane.xlu1 %925 }
 0x333   : > { %v1406_v50 = vpop.eup %1405  ;;  %1417 = vrcp.f32 %v849_v48  ;;  %v712_v51 = vadd.f32 %v2020_v47, %v710_v37  ;;  %v952_v59 = vmax.f32 %v914_v36, %v926_v49 }
 0x334   : > { %v1408_v53 = vpop.eup %1407  ;;  %1419 = vpow2.f32 %v837_v46 }
 0x335   : > { %v714_v54 = vadd.f32 %v2023_v38, %v712_v51  ;;  %v981_v55 = vadd.f32 %v1408_v53, %v1406_v50  ;;  %v2027_v1 = vpop.eup %1409  ;;  %1421 = vpow2.f32 %v843_v42 }
 0x336   : > { %v938_v57 = vpop.xlane.xlu1 %937  ;;  %v1412_v56 = vpop.eup %1411 }
 0x337   : > { %1423 = vrcp.f32 %v714_v54  ;;  %v983_v58 = vadd.f32 %v2027_v1, %v981_v55  ;;  %v954_v61 = vmax.f32 %v952_v59, %v938_v57  ;;  %v588_v54 = vpop.permute.xlu0 %587 }
 0x339   : > { %v985_v60 = vadd.f32 %v1412_v56, %v983_v58 }
 0x33a   : > { %v950_v62 = vpop.xlane.xlu1 %949 }
 0x33b   : > { %v2030_v63 = vpop.eup %1413  ;;  %1425 = vrcp.f32 %v985_v60  ;;  %v956_v0 = vmax.f32 %v954_v61, %v950_v62 }
 0x33c   : > { %v2032_v2 = vpop.eup %1415 }
 0x33d   : > { %v1418_v5 = vpop.eup %1417  ;;  %v846_v6 = vadd.f32 %v2032_v2, %v2030_v63  ;;  %v958_v7 = vsub.f32 %v914_v36, %v956_v0  ;;  %v964_v8 = vsub.f32 %v926_v49, %v956_v0  ;;  %v970_v34 = vsub.f32 %v938_v57, %v956_v0  ;;  %v602_v57 = vpop.permute.xlu0 %601 }
 0x33e   : > { %v1420_v9 = vpop.eup %1419  ;;  %v976_v39 = vsub.f32 %v950_v62, %v956_v0  ;;  %v869_v10 = vmul.f32 %v1418_v5, %v1392_v25  ;;  %v855_v12 = vmul.f32 %v1418_v5, %v1390_v17  ;;  %v889_v41 = vmul.f32 %v1418_v5, %v1396_v31 }
 0x33f   : > { %v848_v13 = vadd.f32 %v1420_v9, %v846_v6  ;;  %v961_v14 = vmul.f32 1.442695, %v958_v7  ;;  %v967_v15 = vmul.f32 1.442695, %v964_v8  ;;  %v1422_v18 = vpop.eup %1421  ;;  %v973_v20 = vmul.f32 1.442695, %v970_v34 }
 0x340   : > { %v871_v21 = vmul.f32 %v869_v10, %v1969_v19  ;;  %v857_v23 = vmul.f32 %v855_v12, %v1969_v19  ;;  %v2039_v27 = vmul.f32 %v1418_v5, %v2014_v4  ;;  %v979_v28 = vmul.f32 1.442695, %v976_v39 }
 0x341   : > { %v1424_v32 = vpop.eup %1423  ;;  %v850_v24 = vadd.f32 %v1422_v18, %v848_v13  ;;  %1427 = vpow2.f32 %v961_v14  ;;  %v891_v25 = vmul.f32 %v889_v41, %v1969_v19  ;;  %v577_v39 = vmul.f32 %v1971_v22, %v1969_v19  ;;  %v616_v22 = vpop.permute.xlu1 %615 }
 0x342   : > { %1429 = vpow2.f32 %v967_v15  ;;  %875 = vrot.lane.b32.xlu1 %v871_v21, %s1481_s25  ;;  %861 = vrot.lane.b32.xlu0 %v857_v23, %s1479_s8  ;;  %v2043_v17 = vmul.f32 %v1424_v32, %v1400_v45  ;;  %v720_v44 = vmul.f32 %v1424_v32, %v2017_v40  ;;  %v740_v51 = vmul.f32 %v1424_v32, %v2020_v47 }
 0x343   : > { %1431 = vrcp.f32 %v850_v24  ;;  %v754_v55 = vmul.f32 %v1424_v32, %v2023_v38  ;;  %v735_v13 = vmul.f32 %v2003_v52, %v1969_v19 }
 0x344   : > { %1433 = vpow2.f32 %v973_v20  ;;  %v742_v40 = vmul.f32 %v740_v51, %v1993_v11  ;;  %v736_v51 = vmul.f32 %v2043_v17, %v1993_v11 }
 0x345   : > { %v1426_v29 = vpop.eup %1425  ;;  %1435 = vpow2.f32 %v979_v28  ;;  %v756_v58 = vmul.f32 %v754_v55, %v1993_v11 }
 0x346   : > { %895 = vrot.lane.b32.xlu0 %v891_v25, %s1480_s9  ;;  %v991_v30 = vmul.f32 %v1426_v29, %v1406_v50  ;;  %v2047_v31 = vmul.f32 %v1426_v29, %v1412_v56  ;;  %v1005_v35 = vmul.f32 %v1426_v29, %v1408_v53  ;;  %v722_v50 = vmul.f32 %v720_v44, %v1993_v11 }
 0x347   : > { %v1019_v15 = vmul.f32 %v1426_v29, %v2027_v1 }
 0x348   : > { %v993_v4 = vmul.f32 %v991_v30, %v1969_v19  ;;  %v1007_v33 = vmul.f32 %v1005_v35, %v1969_v19 }
 0x349   : > { %v1021_v41 = vmul.f32 %v1019_v15, %v1969_v19  ;;  %v1035_v15 = vmul.f32 %v2047_v31, %v1969_v19 }
 0x34a   : > { %997 = vrot.lane.b32.xlu1 %v993_v4, %s1480_s9 }
 0x34b   : > { %v1428_v36 = vpop.eup %1427 }
 0x34c   : > { %v1430_v43 = vpop.eup %1429 }
 0x34d   : > { %v1432_v45 = vpop.eup %1431  ;;  %v982_v46 = vadd.f32 %v1430_v43, %v1428_v36 }
 0x34e   : > { %v1434_v48 = vpop.eup %1433  ;;  %1011 = vrot.lane.b32.xlu1 %v1007_v33, %s1479_s8  ;;  %v2054_v37 = vmul.f32 %v1432_v45, %v1420_v9  ;;  %v856_v59 = vmul.f32 %v1432_v45, %v2030_v63  ;;  %v870_v60 = vmul.f32 %v1432_v45, %v2032_v2  ;;  %v890_v7 = vmul.f32 %v1432_v45, %v1422_v18 }
 0x34f   : > { %v984_v42 = vadd.f32 %v1434_v48, %v982_v46  ;;  %v1436_v49 = vpop.eup %1435  ;;  %v579_v18 = vadd.f32 %v577_v39, %v1809_v3 }
 0x350   : > { %v858_v47 = vmul.f32 %v856_v59, %v1993_v11  ;;  %v872_v38 = vmul.f32 %v870_v60, %v1993_v11  ;;  %v892_v63 = vmul.f32 %v890_v7, %v1993_v11  ;;  %v886_v17 = vmul.f32 %v2054_v37, %v1993_v11 }
 0x351   : > { %v986_v53 = vadd.f32 %v1436_v49, %v984_v42  ;;  %v593_v23 = vadd.f32 %v588_v54, %v579_v18  ;;  %v578_v42 = vmul.f32 %v1995_v16, %v1993_v11 }
 0x352   : > { %727 = vrot.lane.b32.xlu1 %v722_v50, %s1481_s25 }
 0x353   : > { %1437 = vrcp.f32 %v986_v53  ;;  %v607_v32 = vadd.f32 %v602_v57, %v593_v23  ;;  %v580_v53 = vadd.f32 %v578_v42, %v1855_v26 }
 0x355   : > { %v621_v52 = vadd.f32 %v616_v22, %v607_v32 }
 0x356   : > { %747 = vrot.lane.b32.xlu1 %v742_v40, %s1480_s9 }
 0x35a   : > { %761 = vrot.lane.b32.xlu1 %v756_v58, %s1479_s8 }
 0x35c   : > { %v590_v56 = vpop.permute.xlu0 %589 }
 0x35d   : > { %v1438_v61 = vpop.eup %1437  ;;  %v594_v40 = vadd.f32 %v590_v56, %v580_v53 }
 0x35e   : > { %863 = vrot.lane.b32.xlu1 %v858_v47, %s1479_s8  ;;  %v1020_v62 = vmul.f32 %v1438_v61, %v1434_v48  ;;  %v2068_v0 = vmul.f32 %v1438_v61, %v1436_v49  ;;  %v992_v8 = vmul.f32 %v1438_v61, %v1428_v36  ;;  %v1006_v9 = vmul.f32 %v1438_v61, %v1430_v43 }
 0x35f   : > { %v885_v36 = vmul.f32 %v2039_v27, %v1969_v19 }
 0x360   : > { %v604_v5 = vpop.permute.xlu0 %603  ;;  %v1022_v6 = vmul.f32 %v1020_v62, %v1993_v11  ;;  %v994_v34 = vmul.f32 %v992_v8, %v1993_v11  ;;  %v1008_v14 = vmul.f32 %v1006_v9, %v1993_v11 }
 0x361   : > { %v608_v55 = vadd.f32 %v604_v5, %v594_v40 }
 0x362   : > { %877 = vrot.lane.b32.xlu1 %v872_v38, %s1481_s25  ;;  %1027 = vrot.lane.b32.xlu0 %v1022_v6, %s1481_s25 }
 0x364   : > { %v618_v2 = vpop.permute.xlu0 %617 }
 0x365   : > { %v622_v59 = vadd.f32 %v618_v2, %v608_v55 }
 0x366   : > { %897 = vrot.lane.b32.xlu1 %v892_v63, %s1480_s9 }
 0x36a   : > { %999 = vrot.lane.b32.xlu1 %v994_v34, %s1480_s9  ;;  %v726_v10 = vpop.permute.xlu0 %725 }
 0x36b   : > { %v731_v12 = vadd.f32 %v726_v10, %v1809_v3 }
 0x36d   : > { %v737_v20 = vadd.f32 %v735_v13, %v731_v12  ;;  %v1036_v12 = vmul.f32 %v2068_v0, %v1993_v11 }
 0x36e   : > { %1013 = vrot.lane.b32.xlu1 %v1008_v14, %s1479_s8  ;;  %v746_v21 = vpop.permute.xlu0 %745  ;;  %s1176_s8 = sshll.u32 %s188_s28, 4 }
 0x36f   : > { %v751_v24 = vadd.f32 %v746_v21, %v737_v20  ;;  %s209_s9 = scalar_lea.vmem [#allocation3], %s1176_s8 }
 0x372   : > { %1025 = vrot.lane.b32.xlu1 %v1021_v41, %s1481_s25  ;;  %v760_v28 = vpop.permute.xlu0 %759 }
 0x373   : > { %v765_v25 = vadd.f32 %v760_v28, %v751_v24 }
 0x375   : > { %v1039_v30 = vsel %vm484_vm0, %v621_v52, %v765_v25 }
 0x3b4   : > { %v862_v1 = vpop.permute.xlu0 %861  ;;  %v876_v4 = vpop.permute.xlu1 %875 }
 0x3b5   : > { %v867_v29 = vadd.f32 %v862_v1, %v1809_v3 }
 0x3b7   : > { %v881_v35 = vadd.f32 %v876_v4, %v867_v29 }
 0x3b8   : > { %v896_v33 = vpop.permute.xlu0 %895 }
 0x3b9   : > { %v887_v43 = vadd.f32 %v885_v36, %v881_v35 }
 0x3bb   : > { %v901_v44 = vadd.f32 %v896_v33, %v887_v43 }
 0x3bc   : > { %v998_v45 = vpop.permute.xlu1 %997 }
 0x3bd   : > { %v1042_v46 = vsel %vm1041_vm1, %v1039_v30, %v901_v44  ;;  %v1003_v34 = vadd.f32 %v998_v45, %v1809_v3 }
 0x3c0   : > { %v1012_v48 = vpop.permute.xlu1 %1011 }
 0x3c1   : > { %v1017_v10 = vadd.f32 %v1012_v48, %v1003_v34 }
 0x3c4   : > { %v728_v49 = vpop.permute.xlu1 %727 }
 0x3c5   : > { %v732_v50 = vadd.f32 %v728_v49, %v1855_v26 }
 0x3c7   : > { %v738_v27 = vadd.f32 %v736_v51, %v732_v50 }
 0x3c8   : > { %v748_v54 = vpop.permute.xlu1 %747 }
 0x3c9   : > { %v752_v57 = vadd.f32 %v748_v54, %v738_v27 }
 0x3cc   : > { %v762_v58 = vpop.permute.xlu1 %761 }
 0x3cd   : > { %v766_v47 = vadd.f32 %v762_v58, %v752_v57 }
 0x3cf   : > { %v1040_v60 = vsel %vm484_vm0, %v622_v59, %v766_v47 }
 0x3d0   : > { %v864_v16 = vpop.permute.xlu1 %863 }
 0x3d1   : > { %v868_v61 = vadd.f32 %v864_v16, %v1855_v26 }
 0x3d4   : > { %v878_v62 = vpop.permute.xlu1 %877  ;;  %v1028_v39 = vpop.permute.xlu0 %1027 }
 0x3d5   : > { %v882_v38 = vadd.f32 %v878_v62, %v868_v61 }
 0x3d7   : > { %v888_v6 = vadd.f32 %v886_v17, %v882_v38 }
 0x3d8   : > { %v898_v7 = vpop.permute.xlu1 %897 }
 0x3d9   : > { %v902_v63 = vadd.f32 %v898_v7, %v888_v6 }
 0x3db   : > { %v1043_v56 = vsel %vm1041_vm1, %v1040_v60, %v902_v63 }
 0x3dc   : > { %v1000_v5 = vpop.permute.xlu1 %999 }
 0x3dd   : > { %v1004_v8 = vadd.f32 %v1000_v5, %v1855_v26 }
 0x3e0   : > { %v1014_v2 = vpop.permute.xlu1 %1013 }
 0x3e1   : > { %v1018_v9 = vadd.f32 %v1014_v2, %v1004_v8 }
 0x3e3   : > { %v1032_v37 = vadd.f32 %v1028_v39, %v1018_v9 }
 0x3e4   : > { %v1026_v13 = vpop.permute.xlu1 %1025  ;;  %1055 = sbr.rel (!%p1537_p6) target bundleno = 1011 (0x3f3), region = 59 }
 0x3e5   : > { %v1038_v14 = vadd.f32 %v1036_v12, %v1032_v37  ;;  %v1031_v18 = vadd.f32 %v1026_v13, %v1017_v10 }
 0x3e7   : > { %v1046_v26 = vsel %vm1044_vm2, %v1043_v56, %v1038_v14  ;;  %v1037_v20 = vadd.f32 %v1035_v15, %v1031_v18 }
 0x3e8   : > { %1048 = vst [vmem:[%s209_s9 + $0x8] sm:$0xff] %v1046_v26 }
 0x3e9   : > { %v1045_v3 = vsel %vm1044_vm2, %v1042_v46, %v1037_v20 }
 0x3ea   : > { %1047 = vst [vmem:[%s209_s9] sm:$0xff] %v1045_v3 }
 0x3ef   : > { %v1092_v0 = vld [vmem:[%s209_s9 + $0x8] sm:$0xff] }
 0x3f0   : > { %1093 = vst [vmem:[%s1060_s10 + $0x10] sm:$0xff] %v1092_v0 }
 0x3f1   : > { %v1090_v11 = vld [vmem:[%s209_s9] sm:$0xff] }
 0x3f2   : > { %1091 = vst [vmem:[%s1060_s10] sm:$0xff] %v1090_v11 }
 0x3f3 PF: > { %s13_s16 = sadd.s32 1, %s1477_s16   ;;  %s2139_s12 = smov %s1465_s13 }
 0x3f4   : > { %p10_p11 = scmp.ge.s32.totalorder %s13_s16, 4   ;;  %s2140_s13 = smov %s1542_s22 }
 0x3f5   : > { %s2141_s14 = smov %s1473_s15  ;;  %s2142_s15 = smov %s2144_s17 }
 0x3f6   :  { %12 = sbr.rel (!%p10_p11) target bundleno = 3 (0x3), region = 128 }

</bundles_post_ra>
